<compile_context>
chip_gen: v7x
topology: tpu7x:2x2x1
jax: 0.10.0
libtpu: 0.0.40
codegen_flags: <defaults>
</compile_context>

<pallas_src>
import functools

import jax
import jax.numpy as jnp
from jax.experimental import pallas as pl
from jax.experimental.pallas import tpu as pltpu

EPS = 1e-5
_NEG = -3.0e38  # stands in for -inf maxpool padding (never selected for k=3, pad=1)


# --------------------------------------------------------------------------
# Fused Pallas kernel (one batch element per grid step)
# --------------------------------------------------------------------------
def _make_fused_kernel(H, W, Cin, red3, out3, red5, out5, out_pool, stride):
    s = stride
    M = H * W
    # left/right staging margin: >= max |dy*W + dx| over a 5x5 window, rounded
    # up to a vreg lane multiple so the staging store is lane-aligned.
    STAGE = ((2 * W + 2 + 127) // 128) * 128
    c3 = out_pool if out_pool else Cin

    def kernel(*refs):
        it = iter(refs)
        sel_ref = next(it) if s > 1 else None
        x_ref = next(it)
        w1a_ref = next(it); s1a_ref = next(it)     # branch1 1x1 (folded BN)
        w1b_ref = next(it); s1b_ref = next(it)     # branch1 3x3 taps
        w2a_ref = next(it); s2a_ref = next(it)     # branch2 1x1
        w2b_ref = next(it); s2b_ref = next(it)     # branch2 5x5 taps
        if out_pool:
            w3_ref = next(it); s3_ref = next(it)   # branch3 1x1
        o_ref = next(it)
        r1buf = next(it)                           # (red3, M + 2*STAGE)
        r2buf = next(it)                           # (red5, M + 2*STAGE)
        xbuf = next(it)                            # (Cin,  M + 2*STAGE)

        x = x_ref[0]                               # (Cin, M): channels x spatial

        sel = sel_ref[...] if sel_ref is not None else None

        # Lane-position helpers for conv/pool boundary masks.
        lane = jax.lax.broadcasted_iota(jnp.int32, (1, M), 1)
        if W & (W - 1) == 0:
            row = lane >> (W.bit_length() - 1)
            col = lane & (W - 1)
        else:
            row = lane // W
            col = lane - (lane // W) * W

        mask_cache = {}

        def bounds_mask(dy, dx):
            key = (dy, dx)
            if key not in mask_cache:
                conds = []
                if dy > 0:
                    conds.append(row < H - dy)
                elif dy < 0:
                    conds.append(row >= -dy)
                if dx > 0:
                    conds.append(col < W - dx)
                elif dx < 0:
                    conds.append(col >= -dx)
                ok = None
                for c in conds:
                    ok = c if ok is None else (ok & c)
                mask_cache[key] = ok
            return mask_cache[key]

        def stage(buf, arr):
            buf[...] = jnp.zeros_like(buf)
            buf[:, STAGE:STAGE + M] = arr          # vreg-aligned lane store

        def tap(buf, dy, dx, fill):
            off = dy * W + dx
            v = buf[:, STAGE + off:STAGE + off + M]
            ok = bounds_mask(dy, dx)
            return v if ok is None else jnp.where(ok, v, fill)

        def conv1x1(inp, w_ref, sh_ref):
            y = jnp.dot(w_ref[...], inp, preferred_element_type=jnp.float32)
            return jnp.maximum(y + sh_ref[...], 0.0)

        def conv_kxk(buf, w_ref, sh_ref, k, cout):
            p = k // 2
            acc = jnp.zeros((cout, M), jnp.float32)
            for ky in range(k):
                for kx in range(k):
                    t = tap(buf, ky - p, kx - p, 0.0)
                    acc = acc + jnp.dot(w_ref[ky * k + kx], t,
                                        preferred_element_type=jnp.float32)
            return jnp.maximum(acc + sh_ref[...], 0.0)

        def subsample(y):
            # stride-s spatial subsampling as an exact one-hot selection matmul.
            if s == 1:
                return y
            return jnp.dot(y, sel, preferred_element_type=jnp.float32)

        # ---- branch 1: 1x1 reduce -> 3x3 conv (stride s) ----
        stage(r1buf, conv1x1(x, w1a_ref, s1a_ref))
        y1 = subsample(conv_kxk(r1buf, w1b_ref, s1b_ref, 3, out3))

        # ---- branch 2: 1x1 reduce -> 5x5 conv (stride s) ----
        stage(r2buf, conv1x1(x, w2a_ref, s2a_ref))
        y2 = subsample(conv_kxk(r2buf, w2b_ref, s2b_ref, 5, out5))

        # ---- branch 3: 3x3 max-pool (pad 1) [+ 1x1 conv | stride-s subsample] ----
        stage(xbuf, x)
        pooled = x                                  # the (0,0) tap
        for ky in range(3):
            for kx in range(3):
                if ky == 1 and kx == 1:
                    continue
                pooled = jnp.maximum(pooled, tap(xbuf, ky - 1, kx - 1, _NEG))
        if out_pool:
            y3 = conv1x1(pooled, w3_ref, s3_ref)     # pool & conv both stride 1
        else:
            y3 = subsample(pooled)                   # pool stride == block stride

        # ---- fused "concat": write each branch into its channel range ----
        o_ref[0, 0:out3, :] = y1.astype(o_ref.dtype)
        o_ref[0, out3:out3 + out5, :] = y2.astype(o_ref.dtype)
        o_ref[0, out3 + out5:out3 + out5 + c3, :] = y3.astype(o_ref.dtype)

    return kernel


# --------------------------------------------------------------------------
# Host wrapper: BN folding, packing, pallas_call
# --------------------------------------------------------------------------
def _fold_conv_bn(params, k):
    """Fold conv bias + inference-mode BN into (per-tap scaled weights, shift)."""
    w, b, gamma, beta, mean, var = params            # w: (cout, cin, k, k)
    cout, cin = w.shape[0], w.shape[1]
    scale = gamma / jnp.sqrt(var + EPS)               # (cout,)
    shift = (b - mean) * scale + beta                 # (cout,)
    w_taps = jnp.transpose(w, (2, 3, 0, 1)).reshape(k * k, cout, cin)
    w_taps = w_taps * scale[None, :, None]
    return w_taps.astype(jnp.float32), shift.reshape(cout, 1).astype(jnp.float32)


def inception_block_transition(x_nchw, params, stride, out_pool):
    N, Cin, H, W = x_nchw.shape
    s = int(stride)
    Ho, Wo = H // s, W // s
    M, M_out = H * W, Ho * Wo
    STAGE = ((2 * W + 2 + 127) // 128) * 128

    w1a, s1a = _fold_conv_bn(params["b1_1x1"], 1); w1a = w1a[0]
    w1b, s1b = _fold_conv_bn(params["b1_3x3"], 3)
    w2a, s2a = _fold_conv_bn(params["b2_1x1"], 1); w2a = w2a[0]
    w2b, s2b = _fold_conv_bn(params["b2_5x5"], 5)
    red3, out3 = w1a.shape[0], w1b.shape[1]
    red5, out5 = w2a.shape[0], w2b.shape[1]
    if out_pool:
        w3, s3 = _fold_conv_bn(params["b3_1x1"], 1); w3 = w3[0]
        c3 = w3.shape[0]
    else:
        c3 = Cin
    c_total = out3 + out5 + c3

    # NCHW -> (N, C, H*W): layout-trivial reshape (no transpose).
    x_flat = x_nchw.reshape(N, Cin, M).astype(jnp.float32)

    inputs, in_specs = [], []

    def add(arr, spec):
        inputs.append(arr)
        in_specs.append(spec)

    def const_spec(arr):
        zeros = (0,) * arr.ndim
        return pl.BlockSpec(arr.shape, lambda n, _z=zeros: _z)

    if s > 1:
        # One-hot stride-s subsampling matrix: column r selects full-res pixel
        # (r // Wo) * s * W + (r % Wo) * s.
        r = jnp.arange(M_out)
        src = (r // Wo) * (s * W) + (r % Wo) * s
        sel = (jnp.arange(M)[:, None] == src[None, :]).astype(jnp.float32)
        add(sel, const_spec(sel))

    add(x_flat, pl.BlockSpec((1, Cin, M), lambda n: (n, 0, 0)))
    for arr in (w1a, s1a, w1b, s1b, w2a, s2a, w2b, s2b):
        add(arr, const_spec(arr))
    if out_pool:
        for arr in (w3, s3):
            add(arr, const_spec(arr))

    kernel = _make_fused_kernel(H, W, Cin, red3, out3, red5, out5,
                                int(out_pool), s)

    y = pl.pallas_call(
        kernel,
        out_shape=jax.ShapeDtypeStruct((N, c_total, M_out), jnp.float32),
        grid_spec=pltpu.PrefetchScalarGridSpec(
            num_scalar_prefetch=0,
            grid=(N,),
            in_specs=in_specs,
            out_specs=pl.BlockSpec((1, c_total, M_out), lambda n: (n, 0, 0)),
            scratch_shapes=[
                pltpu.VMEM((red3, M + 2 * STAGE), jnp.float32),
                pltpu.VMEM((red5, M + 2 * STAGE), jnp.float32),
                pltpu.VMEM((Cin, M + 2 * STAGE), jnp.float32),
            ],
        ),
        compiler_params=pltpu.CompilerParams(
            dimension_semantics=("parallel",)),
    )(*inputs)

    # (N, c_total, Ho*Wo) -> NCHW: layout-trivial reshape.
    return y.reshape(N, c_total, Ho, Wo)


# --------------------------------------------------------------------------
# Pure-JAX reference (NCHW, HIGHEST precision) for validation
# --------------------------------------------------------------------------
def ref_conv_block(x, params, k, stride, pad):
    w, b, gamma, beta, mean, var = params
    y = jax.lax.conv_general_dilated(
        x, w, (stride, stride), [(pad, pad), (pad, pad)],
        dimension_numbers=("NCHW", "OIHW", "NCHW"),
        precision=jax.lax.Precision.HIGHEST)
    y = y + b[None, :, None, None]
    scale = gamma / jnp.sqrt(var + EPS)
    y = (y - mean[None, :, None, None]) * scale[None, :, None, None] \
        + beta[None, :, None, None]
    return jnp.maximum(y, 0.0)


def ref_maxpool(x, k, stride, pad):
    return jax.lax.reduce_window(
        x, -jnp.inf, jax.lax.max, (1, 1, k, k), (1, 1, stride, stride),
        [(0, 0), (0, 0), (pad, pad), (pad, pad)])


def ref_forward(x, params, stride, out_pool):
    b1 = ref_conv_block(x, params["b1_1x1"], 1, 1, 0)
    b1 = ref_conv_block(b1, params["b1_3x3"], 3, stride, 1)
    b2 = ref_conv_block(x, params["b2_1x1"], 1, 1, 0)
    b2 = ref_conv_block(b2, params["b2_5x5"], 5, stride, 2)
    if out_pool:
        b3 = ref_maxpool(x, 3, 1, 1)
        b3 = ref_conv_block(b3, params["b3_1x1"], 1, 1, 0)
    else:
        b3 = ref_maxpool(x, 3, 2, 1)
    return jnp.concatenate([b1, b2, b3], axis=1)


# --------------------------------------------------------------------------
# Deterministic parameter init (Conv2d + BatchNorm2d shapes)
# --------------------------------------------------------------------------
def init_conv_block_params(key, cin, cout, k):
    kw, kb, kg, kbt = jax.random.split(key, 4)
    bound = 1.0 / float((cin * k * k) ** 0.5)
    w = jax.random.uniform(kw, (cout, cin, k, k), jnp.float32, -bound, bound)
    b = jax.random.uniform(kb, (cout,), jnp.float32, -bound, bound)
    gamma = jax.random.uniform(kg, (cout,), jnp.float32, 0.5, 1.5)
    beta = jax.random.uniform(kbt, (cout,), jnp.float32, -0.5, 0.5)
    mean = jnp.zeros((cout,), jnp.float32)
    var = jnp.ones((cout,), jnp.float32)
    return (w, b, gamma, beta, mean, var)


if __name__ == "__main__":
    N, H, W = 2, 16, 16
    in_channels = 4
    # (red_3x3, out_3x3, red_5x5, out_5x5, out_pool, stride)
    configs = [
        (8, 8, 8, 8, 0, 2),   # transition config: downsample, pool-only 3rd branch
        (8, 8, 8, 8, 8, 1),   # out_pool config: stride 1 everywhere
    ]

    x = jax.random.normal(jax.random.PRNGKey(0),
                          (N, in_channels, H, W), jnp.float32)

    for (red3, out3, red5, out5, out_pool, stride) in configs:
        k1, k2, k3, k4, k5 = jax.random.split(jax.random.PRNGKey(1), 5)
        params = {
            "b1_1x1": init_conv_block_params(k1, in_channels, red3, 1),
            "b1_3x3": init_conv_block_params(k2, red3, out3, 3),
            "b2_1x1": init_conv_block_params(k3, in_channels, red5, 1),
            "b2_5x5": init_conv_block_params(k4, red5, out5, 5),
        }
        if out_pool:
            params["b3_1x1"] = init_conv_block_params(k5, in_channels, out_pool, 1)

        fwd = jax.jit(functools.partial(inception_block_transition,
                                        stride=stride, out_pool=out_pool))
        out = jax.block_until_ready(fwd(x, params))
        ref = jax.block_until_ready(ref_forward(x, params, stride, out_pool))

        c_total = out3 + out5 + (out_pool if out_pool else in_channels)
        assert out.shape == (N, c_total, H // stride, W // stride), out.shape
        # Kernel matmuls run at default MXU precision; the reference runs at
        # Precision.HIGHEST, so the tolerance is loosened accordingly.
        err = float(jnp.max(jnp.abs(out - ref)))
        assert err < 5e-2, f"max abs error {err}"

    print("KERNEL_OK")
</pallas_src>

<mosaic_0001>
module attributes {stable_mosaic.version = 11 : i64} {
  func.func @kernel(%arg0: i32, %arg1: memref<256x64xf32, #tpu.memory_space<vmem>>, %arg2: memref<1x4x256xf32, #tpu.memory_space<vmem>>, %arg3: memref<8x4xf32, #tpu.memory_space<vmem>>, %arg4: memref<8x1xf32, #tpu.memory_space<vmem>>, %arg5: memref<9x8x8xf32, #tpu.memory_space<vmem>>, %arg6: memref<8x1xf32, #tpu.memory_space<vmem>>, %arg7: memref<8x4xf32, #tpu.memory_space<vmem>>, %arg8: memref<8x1xf32, #tpu.memory_space<vmem>>, %arg9: memref<25x8x8xf32, #tpu.memory_space<vmem>>, %arg10: memref<8x1xf32, #tpu.memory_space<vmem>>, %arg11: memref<1x20x64xf32, #tpu.memory_space<vmem>>, %arg12: memref<8x512xf32, #tpu.memory_space<vmem>>, %arg13: memref<8x512xf32, #tpu.memory_space<vmem>>, %arg14: memref<4x512xf32, #tpu.memory_space<vmem>>) attributes {dimension_semantics = [#tpu.dimension_semantics<parallel>], iteration_bounds = array<i64: 2>, scalar_prefetch = 0 : i64, scratch_operands = 3 : i64, tpu.core_type = #tpu.core_type<tc>, window_params = [{pipeline_mode = #tpu.pipeline_mode<synchronous>, transform_indices = @transform_0, window_bounds = array<i64: 256, 64>}, {transform_indices = @transform_1, window_bounds = array<i64: 1, 4, 256>}, {pipeline_mode = #tpu.pipeline_mode<synchronous>, transform_indices = @transform_2, window_bounds = array<i64: 8, 4>}, {pipeline_mode = #tpu.pipeline_mode<synchronous>, transform_indices = @transform_3, window_bounds = array<i64: 8, 1>}, {pipeline_mode = #tpu.pipeline_mode<synchronous>, transform_indices = @transform_4, window_bounds = array<i64: 9, 8, 8>}, {pipeline_mode = #tpu.pipeline_mode<synchronous>, transform_indices = @transform_5, window_bounds = array<i64: 8, 1>}, {pipeline_mode = #tpu.pipeline_mode<synchronous>, transform_indices = @transform_6, window_bounds = array<i64: 8, 4>}, {pipeline_mode = #tpu.pipeline_mode<synchronous>, transform_indices = @transform_7, window_bounds = array<i64: 8, 1>}, {pipeline_mode = #tpu.pipeline_mode<synchronous>, transform_indices = @transform_8, window_bounds = array<i64: 25, 8, 8>}, {pipeline_mode = #tpu.pipeline_mode<synchronous>, transform_indices = @transform_9, window_bounds = array<i64: 8, 1>}, {transform_indices = @transform_10, window_bounds = array<i64: 1, 20, 64>}]} {
    %c0 = arith.constant 0 : index
    %c0_0 = arith.constant 0 : index
    %c0_1 = arith.constant 0 : index
    %0 = vector.load %arg2[%c0, %c0_0, %c0_1] : memref<1x4x256xf32, #tpu.memory_space<vmem>>, vector<1x4x256xf32>
    %1 = vector.shape_cast %0 : vector<1x4x256xf32> to vector<4x256xf32>
    %c0_2 = arith.constant 0 : index
    %c0_3 = arith.constant 0 : index
    %2 = vector.load %arg1[%c0_2, %c0_3] : memref<256x64xf32, #tpu.memory_space<vmem>>, vector<256x64xf32>
    %3 = tpu.iota {dimensions = array<i32: 1>} : vector<1x256xi32>
    %c4_i32 = arith.constant 4 : i32
    %4 = vector.broadcast %c4_i32 : i32 to vector<1x256xi32>
    %5 = arith.shrsi %3, %4 : vector<1x256xi32>
    %c15_i32 = arith.constant 15 : i32
    %6 = vector.broadcast %c15_i32 : i32 to vector<1x256xi32>
    %7 = arith.andi %3, %6 : vector<1x256xi32>
    %c0_4 = arith.constant 0 : index
    %c0_5 = arith.constant 0 : index
    %8 = vector.load %arg3[%c0_4, %c0_5] : memref<8x4xf32, #tpu.memory_space<vmem>>, vector<8x4xf32>
    %cst = arith.constant dense<0.000000e+00> : vector<8x256xf32>
    %9 = tpu.matmul %8, %1, %cst {dimension_numbers = #tpu.dot_dimension_numbers<[1], [0], [0], [1], [0, 0, 1, 1], [], []>} : vector<8x4xf32>, vector<4x256xf32>, vector<8x256xf32> -> vector<8x256xf32>
    %c0_6 = arith.constant 0 : index
    %c0_7 = arith.constant 0 : index
    %10 = vector.load %arg4[%c0_6, %c0_7] : memref<8x1xf32, #tpu.memory_space<vmem>>, vector<8x1xf32>
    %11 = vector.broadcast %10 : vector<8x1xf32> to vector<8x256xf32>
    %12 = arith.addf %9, %11 : vector<8x256xf32>
    %cst_8 = arith.constant 0.000000e+00 : f32
    %13 = vector.broadcast %cst_8 : f32 to vector<8x256xf32>
    %14 = arith.maximumf %12, %13 : vector<8x256xf32>
    %cst_9 = arith.constant 0.000000e+00 : f32
    %15 = vector.broadcast %cst_9 : f32 to vector<8x512xf32>
    %c0_10 = arith.constant 0 : index
    %c0_11 = arith.constant 0 : index
    %16 = vector.load %arg12[%c0_10, %c0_11] : memref<8x512xf32, #tpu.memory_space<vmem>>, vector<8x512xf32>
    tpu.vector_store %arg12[%c0_10, %c0_11], %15 {strides = array<i32>} : memref<8x512xf32, #tpu.memory_space<vmem>>, vector<8x512xf32>,
    %c0_12 = arith.constant 0 : index
    %c128 = arith.constant 128 : index
    %17 = vector.load %arg12[%c0_12, %c128] : memref<8x512xf32, #tpu.memory_space<vmem>>, vector<8x256xf32>
    tpu.vector_store %arg12[%c0_12, %c128], %14 {strides = array<i32>} : memref<8x512xf32, #tpu.memory_space<vmem>>, vector<8x256xf32>,
    %cst_13 = arith.constant 0.000000e+00 : f32
    %18 = vector.broadcast %cst_13 : f32 to vector<8x256xf32>
    %c0_14 = arith.constant 0 : index
    %c111 = arith.constant 111 : index
    %19 = vector.load %arg12[%c0_14, %c111] : memref<8x512xf32, #tpu.memory_space<vmem>>, vector<8x256xf32>
    %c1_i32 = arith.constant 1 : i32
    %20 = vector.broadcast %c1_i32 : i32 to vector<1x256xi32>
    %21 = arith.cmpi sge, %5, %20 : vector<1x256xi32>
    %c1_i32_15 = arith.constant 1 : i32
    %22 = vector.broadcast %c1_i32_15 : i32 to vector<1x256xi32>
    %23 = arith.cmpi sge, %7, %22 : vector<1x256xi32>
    %24 = arith.andi %21, %23 : vector<1x256xi1>
    %cst_16 = arith.constant 0.000000e+00 : f32
    %25 = vector.shape_cast %24 : vector<1x256xi1> to vector<1x256xi1>
    %26 = vector.broadcast %25 : vector<1x256xi1> to vector<8x256xi1>
    %27 = vector.broadcast %cst_16 : f32 to vector<8x256xf32>
    %28 = arith.select %26, %19, %27 : vector<8x256xi1>, vector<8x256xf32>
    %c0_17 = arith.constant 0 : index
    %c0_18 = arith.constant 0 : index
    %c0_19 = arith.constant 0 : index
    %29 = vector.load %arg5[%c0_17, %c0_18, %c0_19] : memref<9x8x8xf32, #tpu.memory_space<vmem>>, vector<1x8x8xf32>
    %30 = vector.shape_cast %29 : vector<1x8x8xf32> to vector<8x8xf32>
    %cst_20 = arith.constant dense<0.000000e+00> : vector<8x256xf32>
    %31 = tpu.matmul %30, %28, %cst_20 {dimension_numbers = #tpu.dot_dimension_numbers<[1], [0], [0], [1], [0, 0, 1, 1], [], []>} : vector<8x8xf32>, vector<8x256xf32>, vector<8x256xf32> -> vector<8x256xf32>
    %32 = arith.addf %18, %31 : vector<8x256xf32>
    %c0_21 = arith.constant 0 : index
    %c112 = arith.constant 112 : index
    %33 = vector.load %arg12[%c0_21, %c112] : memref<8x512xf32, #tpu.memory_space<vmem>>, vector<8x256xf32>
    %c1_i32_22 = arith.constant 1 : i32
    %34 = vector.broadcast %c1_i32_22 : i32 to vector<1x256xi32>
    %35 = arith.cmpi sge, %5, %34 : vector<1x256xi32>
    %cst_23 = arith.constant 0.000000e+00 : f32
    %36 = vector.shape_cast %35 : vector<1x256xi1> to vector<1x256xi1>
    %37 = vector.broadcast %36 : vector<1x256xi1> to vector<8x256xi1>
    %38 = vector.broadcast %cst_23 : f32 to vector<8x256xf32>
    %39 = arith.select %37, %33, %38 : vector<8x256xi1>, vector<8x256xf32>
    %c1 = arith.constant 1 : index
    %c0_24 = arith.constant 0 : index
    %c0_25 = arith.constant 0 : index
    %40 = vector.load %arg5[%c1, %c0_24, %c0_25] : memref<9x8x8xf32, #tpu.memory_space<vmem>>, vector<1x8x8xf32>
    %41 = vector.shape_cast %40 : vector<1x8x8xf32> to vector<8x8xf32>
    %cst_26 = arith.constant dense<0.000000e+00> : vector<8x256xf32>
    %42 = tpu.matmul %41, %39, %cst_26 {dimension_numbers = #tpu.dot_dimension_numbers<[1], [0], [0], [1], [0, 0, 1, 1], [], []>} : vector<8x8xf32>, vector<8x256xf32>, vector<8x256xf32> -> vector<8x256xf32>
    %43 = arith.addf %32, %42 : vector<8x256xf32>
    %c0_27 = arith.constant 0 : index
    %c113 = arith.constant 113 : index
    %44 = vector.load %arg12[%c0_27, %c113] : memref<8x512xf32, #tpu.memory_space<vmem>>, vector<8x256xf32>
    %c1_i32_28 = arith.constant 1 : i32
    %45 = vector.broadcast %c1_i32_28 : i32 to vector<1x256xi32>
    %46 = arith.cmpi sge, %5, %45 : vector<1x256xi32>
    %c15_i32_29 = arith.constant 15 : i32
    %47 = vector.broadcast %c15_i32_29 : i32 to vector<1x256xi32>
    %48 = arith.cmpi slt, %7, %47 : vector<1x256xi32>
    %49 = arith.andi %46, %48 : vector<1x256xi1>
    %cst_30 = arith.constant 0.000000e+00 : f32
    %50 = vector.shape_cast %49 : vector<1x256xi1> to vector<1x256xi1>
    %51 = vector.broadcast %50 : vector<1x256xi1> to vector<8x256xi1>
    %52 = vector.broadcast %cst_30 : f32 to vector<8x256xf32>
    %53 = arith.select %51, %44, %52 : vector<8x256xi1>, vector<8x256xf32>
    %c2 = arith.constant 2 : index
    %c0_31 = arith.constant 0 : index
    %c0_32 = arith.constant 0 : index
    %54 = vector.load %arg5[%c2, %c0_31, %c0_32] : memref<9x8x8xf32, #tpu.memory_space<vmem>>, vector<1x8x8xf32>
    %55 = vector.shape_cast %54 : vector<1x8x8xf32> to vector<8x8xf32>
    %cst_33 = arith.constant dense<0.000000e+00> : vector<8x256xf32>
    %56 = tpu.matmul %55, %53, %cst_33 {dimension_numbers = #tpu.dot_dimension_numbers<[1], [0], [0], [1], [0, 0, 1, 1], [], []>} : vector<8x8xf32>, vector<8x256xf32>, vector<8x256xf32> -> vector<8x256xf32>
    %57 = arith.addf %43, %56 : vector<8x256xf32>
    %c0_34 = arith.constant 0 : index
    %c127 = arith.constant 127 : index
    %58 = vector.load %arg12[%c0_34, %c127] : memref<8x512xf32, #tpu.memory_space<vmem>>, vector<8x256xf32>
    %c1_i32_35 = arith.constant 1 : i32
    %59 = vector.broadcast %c1_i32_35 : i32 to vector<1x256xi32>
    %60 = arith.cmpi sge, %7, %59 : vector<1x256xi32>
    %cst_36 = arith.constant 0.000000e+00 : f32
    %61 = vector.shape_cast %60 : vector<1x256xi1> to vector<1x256xi1>
    %62 = vector.broadcast %61 : vector<1x256xi1> to vector<8x256xi1>
    %63 = vector.broadcast %cst_36 : f32 to vector<8x256xf32>
    %64 = arith.select %62, %58, %63 : vector<8x256xi1>, vector<8x256xf32>
    %c3 = arith.constant 3 : index
    %c0_37 = arith.constant 0 : index
    %c0_38 = arith.constant 0 : index
    %65 = vector.load %arg5[%c3, %c0_37, %c0_38] : memref<9x8x8xf32, #tpu.memory_space<vmem>>, vector<1x8x8xf32>
    %66 = vector.shape_cast %65 : vector<1x8x8xf32> to vector<8x8xf32>
    %cst_39 = arith.constant dense<0.000000e+00> : vector<8x256xf32>
    %67 = tpu.matmul %66, %64, %cst_39 {dimension_numbers = #tpu.dot_dimension_numbers<[1], [0], [0], [1], [0, 0, 1, 1], [], []>} : vector<8x8xf32>, vector<8x256xf32>, vector<8x256xf32> -> vector<8x256xf32>
    %68 = arith.addf %57, %67 : vector<8x256xf32>
    %c0_40 = arith.constant 0 : index
    %c128_41 = arith.constant 128 : index
    %69 = vector.load %arg12[%c0_40, %c128_41] : memref<8x512xf32, #tpu.memory_space<vmem>>, vector<8x256xf32>
    %c4 = arith.constant 4 : index
    %c0_42 = arith.constant 0 : index
    %c0_43 = arith.constant 0 : index
    %70 = vector.load %arg5[%c4, %c0_42, %c0_43] : memref<9x8x8xf32, #tpu.memory_space<vmem>>, vector<1x8x8xf32>
    %71 = vector.shape_cast %70 : vector<1x8x8xf32> to vector<8x8xf32>
    %cst_44 = arith.constant dense<0.000000e+00> : vector<8x256xf32>
    %72 = tpu.matmul %71, %69, %cst_44 {dimension_numbers = #tpu.dot_dimension_numbers<[1], [0], [0], [1], [0, 0, 1, 1], [], []>} : vector<8x8xf32>, vector<8x256xf32>, vector<8x256xf32> -> vector<8x256xf32>
    %73 = arith.addf %68, %72 : vector<8x256xf32>
    %c0_45 = arith.constant 0 : index
    %c129 = arith.constant 129 : index
    %74 = vector.load %arg12[%c0_45, %c129] : memref<8x512xf32, #tpu.memory_space<vmem>>, vector<8x256xf32>
    %c15_i32_46 = arith.constant 15 : i32
    %75 = vector.broadcast %c15_i32_46 : i32 to vector<1x256xi32>
    %76 = arith.cmpi slt, %7, %75 : vector<1x256xi32>
    %cst_47 = arith.constant 0.000000e+00 : f32
    %77 = vector.shape_cast %76 : vector<1x256xi1> to vector<1x256xi1>
    %78 = vector.broadcast %77 : vector<1x256xi1> to vector<8x256xi1>
    %79 = vector.broadcast %cst_47 : f32 to vector<8x256xf32>
    %80 = arith.select %78, %74, %79 : vector<8x256xi1>, vector<8x256xf32>
    %c5 = arith.constant 5 : index
    %c0_48 = arith.constant 0 : index
    %c0_49 = arith.constant 0 : index
    %81 = vector.load %arg5[%c5, %c0_48, %c0_49] : memref<9x8x8xf32, #tpu.memory_space<vmem>>, vector<1x8x8xf32>
    %82 = vector.shape_cast %81 : vector<1x8x8xf32> to vector<8x8xf32>
    %cst_50 = arith.constant dense<0.000000e+00> : vector<8x256xf32>
    %83 = tpu.matmul %82, %80, %cst_50 {dimension_numbers = #tpu.dot_dimension_numbers<[1], [0], [0], [1], [0, 0, 1, 1], [], []>} : vector<8x8xf32>, vector<8x256xf32>, vector<8x256xf32> -> vector<8x256xf32>
    %84 = arith.addf %73, %83 : vector<8x256xf32>
    %c0_51 = arith.constant 0 : index
    %c143 = arith.constant 143 : index
    %85 = vector.load %arg12[%c0_51, %c143] : memref<8x512xf32, #tpu.memory_space<vmem>>, vector<8x256xf32>
    %c15_i32_52 = arith.constant 15 : i32
    %86 = vector.broadcast %c15_i32_52 : i32 to vector<1x256xi32>
    %87 = arith.cmpi slt, %5, %86 : vector<1x256xi32>
    %c1_i32_53 = arith.constant 1 : i32
    %88 = vector.broadcast %c1_i32_53 : i32 to vector<1x256xi32>
    %89 = arith.cmpi sge, %7, %88 : vector<1x256xi32>
    %90 = arith.andi %87, %89 : vector<1x256xi1>
    %cst_54 = arith.constant 0.000000e+00 : f32
    %91 = vector.shape_cast %90 : vector<1x256xi1> to vector<1x256xi1>
    %92 = vector.broadcast %91 : vector<1x256xi1> to vector<8x256xi1>
    %93 = vector.broadcast %cst_54 : f32 to vector<8x256xf32>
    %94 = arith.select %92, %85, %93 : vector<8x256xi1>, vector<8x256xf32>
    %c6 = arith.constant 6 : index
    %c0_55 = arith.constant 0 : index
    %c0_56 = arith.constant 0 : index
    %95 = vector.load %arg5[%c6, %c0_55, %c0_56] : memref<9x8x8xf32, #tpu.memory_space<vmem>>, vector<1x8x8xf32>
    %96 = vector.shape_cast %95 : vector<1x8x8xf32> to vector<8x8xf32>
    %cst_57 = arith.constant dense<0.000000e+00> : vector<8x256xf32>
    %97 = tpu.matmul %96, %94, %cst_57 {dimension_numbers = #tpu.dot_dimension_numbers<[1], [0], [0], [1], [0, 0, 1, 1], [], []>} : vector<8x8xf32>, vector<8x256xf32>, vector<8x256xf32> -> vector<8x256xf32>
    %98 = arith.addf %84, %97 : vector<8x256xf32>
    %c0_58 = arith.constant 0 : index
    %c144 = arith.constant 144 : index
    %99 = vector.load %arg12[%c0_58, %c144] : memref<8x512xf32, #tpu.memory_space<vmem>>, vector<8x256xf32>
    %c15_i32_59 = arith.constant 15 : i32
    %100 = vector.broadcast %c15_i32_59 : i32 to vector<1x256xi32>
    %101 = arith.cmpi slt, %5, %100 : vector<1x256xi32>
    %cst_60 = arith.constant 0.000000e+00 : f32
    %102 = vector.shape_cast %101 : vector<1x256xi1> to vector<1x256xi1>
    %103 = vector.broadcast %102 : vector<1x256xi1> to vector<8x256xi1>
    %104 = vector.broadcast %cst_60 : f32 to vector<8x256xf32>
    %105 = arith.select %103, %99, %104 : vector<8x256xi1>, vector<8x256xf32>
    %c7 = arith.constant 7 : index
    %c0_61 = arith.constant 0 : index
    %c0_62 = arith.constant 0 : index
    %106 = vector.load %arg5[%c7, %c0_61, %c0_62] : memref<9x8x8xf32, #tpu.memory_space<vmem>>, vector<1x8x8xf32>
    %107 = vector.shape_cast %106 : vector<1x8x8xf32> to vector<8x8xf32>
    %cst_63 = arith.constant dense<0.000000e+00> : vector<8x256xf32>
    %108 = tpu.matmul %107, %105, %cst_63 {dimension_numbers = #tpu.dot_dimension_numbers<[1], [0], [0], [1], [0, 0, 1, 1], [], []>} : vector<8x8xf32>, vector<8x256xf32>, vector<8x256xf32> -> vector<8x256xf32>
    %109 = arith.addf %98, %108 : vector<8x256xf32>
    %c0_64 = arith.constant 0 : index
    %c145 = arith.constant 145 : index
    %110 = vector.load %arg12[%c0_64, %c145] : memref<8x512xf32, #tpu.memory_space<vmem>>, vector<8x256xf32>
    %c15_i32_65 = arith.constant 15 : i32
    %111 = vector.broadcast %c15_i32_65 : i32 to vector<1x256xi32>
    %112 = arith.cmpi slt, %5, %111 : vector<1x256xi32>
    %c15_i32_66 = arith.constant 15 : i32
    %113 = vector.broadcast %c15_i32_66 : i32 to vector<1x256xi32>
    %114 = arith.cmpi slt, %7, %113 : vector<1x256xi32>
    %115 = arith.andi %112, %114 : vector<1x256xi1>
    %cst_67 = arith.constant 0.000000e+00 : f32
    %116 = vector.shape_cast %115 : vector<1x256xi1> to vector<1x256xi1>
    %117 = vector.broadcast %116 : vector<1x256xi1> to vector<8x256xi1>
    %118 = vector.broadcast %cst_67 : f32 to vector<8x256xf32>
    %119 = arith.select %117, %110, %118 : vector<8x256xi1>, vector<8x256xf32>
    %c8 = arith.constant 8 : index
    %c0_68 = arith.constant 0 : index
    %c0_69 = arith.constant 0 : index
    %120 = vector.load %arg5[%c8, %c0_68, %c0_69] : memref<9x8x8xf32, #tpu.memory_space<vmem>>, vector<1x8x8xf32>
    %121 = vector.shape_cast %120 : vector<1x8x8xf32> to vector<8x8xf32>
    %cst_70 = arith.constant dense<0.000000e+00> : vector<8x256xf32>
    %122 = tpu.matmul %121, %119, %cst_70 {dimension_numbers = #tpu.dot_dimension_numbers<[1], [0], [0], [1], [0, 0, 1, 1], [], []>} : vector<8x8xf32>, vector<8x256xf32>, vector<8x256xf32> -> vector<8x256xf32>
    %123 = arith.addf %109, %122 : vector<8x256xf32>
    %c0_71 = arith.constant 0 : index
    %c0_72 = arith.constant 0 : index
    %124 = vector.load %arg6[%c0_71, %c0_72] : memref<8x1xf32, #tpu.memory_space<vmem>>, vector<8x1xf32>
    %125 = vector.broadcast %124 : vector<8x1xf32> to vector<8x256xf32>
    %126 = arith.addf %123, %125 : vector<8x256xf32>
    %cst_73 = arith.constant 0.000000e+00 : f32
    %127 = vector.broadcast %cst_73 : f32 to vector<8x256xf32>
    %128 = arith.maximumf %126, %127 : vector<8x256xf32>
    %cst_74 = arith.constant dense<0.000000e+00> : vector<8x64xf32>
    %129 = tpu.matmul %128, %2, %cst_74 {dimension_numbers = #tpu.dot_dimension_numbers<[1], [0], [0], [1], [0, 0, 1, 1], [], []>} : vector<8x256xf32>, vector<256x64xf32>, vector<8x64xf32> -> vector<8x64xf32>
    %c0_75 = arith.constant 0 : index
    %c0_76 = arith.constant 0 : index
    %130 = vector.load %arg7[%c0_75, %c0_76] : memref<8x4xf32, #tpu.memory_space<vmem>>, vector<8x4xf32>
    %cst_77 = arith.constant dense<0.000000e+00> : vector<8x256xf32>
    %131 = tpu.matmul %130, %1, %cst_77 {dimension_numbers = #tpu.dot_dimension_numbers<[1], [0], [0], [1], [0, 0, 1, 1], [], []>} : vector<8x4xf32>, vector<4x256xf32>, vector<8x256xf32> -> vector<8x256xf32>
    %c0_78 = arith.constant 0 : index
    %c0_79 = arith.constant 0 : index
    %132 = vector.load %arg8[%c0_78, %c0_79] : memref<8x1xf32, #tpu.memory_space<vmem>>, vector<8x1xf32>
    %133 = vector.broadcast %132 : vector<8x1xf32> to vector<8x256xf32>
    %134 = arith.addf %131, %133 : vector<8x256xf32>
    %cst_80 = arith.constant 0.000000e+00 : f32
    %135 = vector.broadcast %cst_80 : f32 to vector<8x256xf32>
    %136 = arith.maximumf %134, %135 : vector<8x256xf32>
    %cst_81 = arith.constant 0.000000e+00 : f32
    %137 = vector.broadcast %cst_81 : f32 to vector<8x512xf32>
    %c0_82 = arith.constant 0 : index
    %c0_83 = arith.constant 0 : index
    %138 = vector.load %arg13[%c0_82, %c0_83] : memref<8x512xf32, #tpu.memory_space<vmem>>, vector<8x512xf32>
    tpu.vector_store %arg13[%c0_82, %c0_83], %137 {strides = array<i32>} : memref<8x512xf32, #tpu.memory_space<vmem>>, vector<8x512xf32>,
    %c0_84 = arith.constant 0 : index
    %c128_85 = arith.constant 128 : index
    %139 = vector.load %arg13[%c0_84, %c128_85] : memref<8x512xf32, #tpu.memory_space<vmem>>, vector<8x256xf32>
    tpu.vector_store %arg13[%c0_84, %c128_85], %136 {strides = array<i32>} : memref<8x512xf32, #tpu.memory_space<vmem>>, vector<8x256xf32>,
    %cst_86 = arith.constant 0.000000e+00 : f32
    %140 = vector.broadcast %cst_86 : f32 to vector<8x256xf32>
    %c0_87 = arith.constant 0 : index
    %c94 = arith.constant 94 : index
    %141 = vector.load %arg13[%c0_87, %c94] : memref<8x512xf32, #tpu.memory_space<vmem>>, vector<8x256xf32>
    %c2_i32 = arith.constant 2 : i32
    %142 = vector.broadcast %c2_i32 : i32 to vector<1x256xi32>
    %143 = arith.cmpi sge, %5, %142 : vector<1x256xi32>
    %c2_i32_88 = arith.constant 2 : i32
    %144 = vector.broadcast %c2_i32_88 : i32 to vector<1x256xi32>
    %145 = arith.cmpi sge, %7, %144 : vector<1x256xi32>
    %146 = arith.andi %143, %145 : vector<1x256xi1>
    %cst_89 = arith.constant 0.000000e+00 : f32
    %147 = vector.shape_cast %146 : vector<1x256xi1> to vector<1x256xi1>
    %148 = vector.broadcast %147 : vector<1x256xi1> to vector<8x256xi1>
    %149 = vector.broadcast %cst_89 : f32 to vector<8x256xf32>
    %150 = arith.select %148, %141, %149 : vector<8x256xi1>, vector<8x256xf32>
    %c0_90 = arith.constant 0 : index
    %c0_91 = arith.constant 0 : index
    %c0_92 = arith.constant 0 : index
    %151 = vector.load %arg9[%c0_90, %c0_91, %c0_92] : memref<25x8x8xf32, #tpu.memory_space<vmem>>, vector<1x8x8xf32>
    %152 = vector.shape_cast %151 : vector<1x8x8xf32> to vector<8x8xf32>
    %cst_93 = arith.constant dense<0.000000e+00> : vector<8x256xf32>
    %153 = tpu.matmul %152, %150, %cst_93 {dimension_numbers = #tpu.dot_dimension_numbers<[1], [0], [0], [1], [0, 0, 1, 1], [], []>} : vector<8x8xf32>, vector<8x256xf32>, vector<8x256xf32> -> vector<8x256xf32>
    %154 = arith.addf %140, %153 : vector<8x256xf32>
    %c0_94 = arith.constant 0 : index
    %c95 = arith.constant 95 : index
    %155 = vector.load %arg13[%c0_94, %c95] : memref<8x512xf32, #tpu.memory_space<vmem>>, vector<8x256xf32>
    %c2_i32_95 = arith.constant 2 : i32
    %156 = vector.broadcast %c2_i32_95 : i32 to vector<1x256xi32>
    %157 = arith.cmpi sge, %5, %156 : vector<1x256xi32>
    %c1_i32_96 = arith.constant 1 : i32
    %158 = vector.broadcast %c1_i32_96 : i32 to vector<1x256xi32>
    %159 = arith.cmpi sge, %7, %158 : vector<1x256xi32>
    %160 = arith.andi %157, %159 : vector<1x256xi1>
    %cst_97 = arith.constant 0.000000e+00 : f32
    %161 = vector.shape_cast %160 : vector<1x256xi1> to vector<1x256xi1>
    %162 = vector.broadcast %161 : vector<1x256xi1> to vector<8x256xi1>
    %163 = vector.broadcast %cst_97 : f32 to vector<8x256xf32>
    %164 = arith.select %162, %155, %163 : vector<8x256xi1>, vector<8x256xf32>
    %c1_98 = arith.constant 1 : index
    %c0_99 = arith.constant 0 : index
    %c0_100 = arith.constant 0 : index
    %165 = vector.load %arg9[%c1_98, %c0_99, %c0_100] : memref<25x8x8xf32, #tpu.memory_space<vmem>>, vector<1x8x8xf32>
    %166 = vector.shape_cast %165 : vector<1x8x8xf32> to vector<8x8xf32>
    %cst_101 = arith.constant dense<0.000000e+00> : vector<8x256xf32>
    %167 = tpu.matmul %166, %164, %cst_101 {dimension_numbers = #tpu.dot_dimension_numbers<[1], [0], [0], [1], [0, 0, 1, 1], [], []>} : vector<8x8xf32>, vector<8x256xf32>, vector<8x256xf32> -> vector<8x256xf32>
    %168 = arith.addf %154, %167 : vector<8x256xf32>
    %c0_102 = arith.constant 0 : index
    %c96 = arith.constant 96 : index
    %169 = vector.load %arg13[%c0_102, %c96] : memref<8x512xf32, #tpu.memory_space<vmem>>, vector<8x256xf32>
    %c2_i32_103 = arith.constant 2 : i32
    %170 = vector.broadcast %c2_i32_103 : i32 to vector<1x256xi32>
    %171 = arith.cmpi sge, %5, %170 : vector<1x256xi32>
    %cst_104 = arith.constant 0.000000e+00 : f32
    %172 = vector.shape_cast %171 : vector<1x256xi1> to vector<1x256xi1>
    %173 = vector.broadcast %172 : vector<1x256xi1> to vector<8x256xi1>
    %174 = vector.broadcast %cst_104 : f32 to vector<8x256xf32>
    %175 = arith.select %173, %169, %174 : vector<8x256xi1>, vector<8x256xf32>
    %c2_105 = arith.constant 2 : index
    %c0_106 = arith.constant 0 : index
    %c0_107 = arith.constant 0 : index
    %176 = vector.load %arg9[%c2_105, %c0_106, %c0_107] : memref<25x8x8xf32, #tpu.memory_space<vmem>>, vector<1x8x8xf32>
    %177 = vector.shape_cast %176 : vector<1x8x8xf32> to vector<8x8xf32>
    %cst_108 = arith.constant dense<0.000000e+00> : vector<8x256xf32>
    %178 = tpu.matmul %177, %175, %cst_108 {dimension_numbers = #tpu.dot_dimension_numbers<[1], [0], [0], [1], [0, 0, 1, 1], [], []>} : vector<8x8xf32>, vector<8x256xf32>, vector<8x256xf32> -> vector<8x256xf32>
    %179 = arith.addf %168, %178 : vector<8x256xf32>
    %c0_109 = arith.constant 0 : index
    %c97 = arith.constant 97 : index
    %180 = vector.load %arg13[%c0_109, %c97] : memref<8x512xf32, #tpu.memory_space<vmem>>, vector<8x256xf32>
    %c2_i32_110 = arith.constant 2 : i32
    %181 = vector.broadcast %c2_i32_110 : i32 to vector<1x256xi32>
    %182 = arith.cmpi sge, %5, %181 : vector<1x256xi32>
    %c15_i32_111 = arith.constant 15 : i32
    %183 = vector.broadcast %c15_i32_111 : i32 to vector<1x256xi32>
    %184 = arith.cmpi slt, %7, %183 : vector<1x256xi32>
    %185 = arith.andi %182, %184 : vector<1x256xi1>
    %cst_112 = arith.constant 0.000000e+00 : f32
    %186 = vector.shape_cast %185 : vector<1x256xi1> to vector<1x256xi1>
    %187 = vector.broadcast %186 : vector<1x256xi1> to vector<8x256xi1>
    %188 = vector.broadcast %cst_112 : f32 to vector<8x256xf32>
    %189 = arith.select %187, %180, %188 : vector<8x256xi1>, vector<8x256xf32>
    %c3_113 = arith.constant 3 : index
    %c0_114 = arith.constant 0 : index
    %c0_115 = arith.constant 0 : index
    %190 = vector.load %arg9[%c3_113, %c0_114, %c0_115] : memref<25x8x8xf32, #tpu.memory_space<vmem>>, vector<1x8x8xf32>
    %191 = vector.shape_cast %190 : vector<1x8x8xf32> to vector<8x8xf32>
    %cst_116 = arith.constant dense<0.000000e+00> : vector<8x256xf32>
    %192 = tpu.matmul %191, %189, %cst_116 {dimension_numbers = #tpu.dot_dimension_numbers<[1], [0], [0], [1], [0, 0, 1, 1], [], []>} : vector<8x8xf32>, vector<8x256xf32>, vector<8x256xf32> -> vector<8x256xf32>
    %193 = arith.addf %179, %192 : vector<8x256xf32>
    %c0_117 = arith.constant 0 : index
    %c98 = arith.constant 98 : index
    %194 = vector.load %arg13[%c0_117, %c98] : memref<8x512xf32, #tpu.memory_space<vmem>>, vector<8x256xf32>
    %c2_i32_118 = arith.constant 2 : i32
    %195 = vector.broadcast %c2_i32_118 : i32 to vector<1x256xi32>
    %196 = arith.cmpi sge, %5, %195 : vector<1x256xi32>
    %c14_i32 = arith.constant 14 : i32
    %197 = vector.broadcast %c14_i32 : i32 to vector<1x256xi32>
    %198 = arith.cmpi slt, %7, %197 : vector<1x256xi32>
    %199 = arith.andi %196, %198 : vector<1x256xi1>
    %cst_119 = arith.constant 0.000000e+00 : f32
    %200 = vector.shape_cast %199 : vector<1x256xi1> to vector<1x256xi1>
    %201 = vector.broadcast %200 : vector<1x256xi1> to vector<8x256xi1>
    %202 = vector.broadcast %cst_119 : f32 to vector<8x256xf32>
    %203 = arith.select %201, %194, %202 : vector<8x256xi1>, vector<8x256xf32>
    %c4_120 = arith.constant 4 : index
    %c0_121 = arith.constant 0 : index
    %c0_122 = arith.constant 0 : index
    %204 = vector.load %arg9[%c4_120, %c0_121, %c0_122] : memref<25x8x8xf32, #tpu.memory_space<vmem>>, vector<1x8x8xf32>
    %205 = vector.shape_cast %204 : vector<1x8x8xf32> to vector<8x8xf32>
    %cst_123 = arith.constant dense<0.000000e+00> : vector<8x256xf32>
    %206 = tpu.matmul %205, %203, %cst_123 {dimension_numbers = #tpu.dot_dimension_numbers<[1], [0], [0], [1], [0, 0, 1, 1], [], []>} : vector<8x8xf32>, vector<8x256xf32>, vector<8x256xf32> -> vector<8x256xf32>
    %207 = arith.addf %193, %206 : vector<8x256xf32>
    %c0_124 = arith.constant 0 : index
    %c110 = arith.constant 110 : index
    %208 = vector.load %arg13[%c0_124, %c110] : memref<8x512xf32, #tpu.memory_space<vmem>>, vector<8x256xf32>
    %c1_i32_125 = arith.constant 1 : i32
    %209 = vector.broadcast %c1_i32_125 : i32 to vector<1x256xi32>
    %210 = arith.cmpi sge, %5, %209 : vector<1x256xi32>
    %c2_i32_126 = arith.constant 2 : i32
    %211 = vector.broadcast %c2_i32_126 : i32 to vector<1x256xi32>
    %212 = arith.cmpi sge, %7, %211 : vector<1x256xi32>
    %213 = arith.andi %210, %212 : vector<1x256xi1>
    %cst_127 = arith.constant 0.000000e+00 : f32
    %214 = vector.shape_cast %213 : vector<1x256xi1> to vector<1x256xi1>
    %215 = vector.broadcast %214 : vector<1x256xi1> to vector<8x256xi1>
    %216 = vector.broadcast %cst_127 : f32 to vector<8x256xf32>
    %217 = arith.select %215, %208, %216 : vector<8x256xi1>, vector<8x256xf32>
    %c5_128 = arith.constant 5 : index
    %c0_129 = arith.constant 0 : index
    %c0_130 = arith.constant 0 : index
    %218 = vector.load %arg9[%c5_128, %c0_129, %c0_130] : memref<25x8x8xf32, #tpu.memory_space<vmem>>, vector<1x8x8xf32>
    %219 = vector.shape_cast %218 : vector<1x8x8xf32> to vector<8x8xf32>
    %cst_131 = arith.constant dense<0.000000e+00> : vector<8x256xf32>
    %220 = tpu.matmul %219, %217, %cst_131 {dimension_numbers = #tpu.dot_dimension_numbers<[1], [0], [0], [1], [0, 0, 1, 1], [], []>} : vector<8x8xf32>, vector<8x256xf32>, vector<8x256xf32> -> vector<8x256xf32>
    %221 = arith.addf %207, %220 : vector<8x256xf32>
    %c0_132 = arith.constant 0 : index
    %c111_133 = arith.constant 111 : index
    %222 = vector.load %arg13[%c0_132, %c111_133] : memref<8x512xf32, #tpu.memory_space<vmem>>, vector<8x256xf32>
    %cst_134 = arith.constant 0.000000e+00 : f32
    %223 = vector.shape_cast %24 : vector<1x256xi1> to vector<1x256xi1>
    %224 = vector.broadcast %223 : vector<1x256xi1> to vector<8x256xi1>
    %225 = vector.broadcast %cst_134 : f32 to vector<8x256xf32>
    %226 = arith.select %224, %222, %225 : vector<8x256xi1>, vector<8x256xf32>
    %c6_135 = arith.constant 6 : index
    %c0_136 = arith.constant 0 : index
    %c0_137 = arith.constant 0 : index
    %227 = vector.load %arg9[%c6_135, %c0_136, %c0_137] : memref<25x8x8xf32, #tpu.memory_space<vmem>>, vector<1x8x8xf32>
    %228 = vector.shape_cast %227 : vector<1x8x8xf32> to vector<8x8xf32>
    %cst_138 = arith.constant dense<0.000000e+00> : vector<8x256xf32>
    %229 = tpu.matmul %228, %226, %cst_138 {dimension_numbers = #tpu.dot_dimension_numbers<[1], [0], [0], [1], [0, 0, 1, 1], [], []>} : vector<8x8xf32>, vector<8x256xf32>, vector<8x256xf32> -> vector<8x256xf32>
    %230 = arith.addf %221, %229 : vector<8x256xf32>
    %c0_139 = arith.constant 0 : index
    %c112_140 = arith.constant 112 : index
    %231 = vector.load %arg13[%c0_139, %c112_140] : memref<8x512xf32, #tpu.memory_space<vmem>>, vector<8x256xf32>
    %cst_141 = arith.constant 0.000000e+00 : f32
    %232 = vector.shape_cast %35 : vector<1x256xi1> to vector<1x256xi1>
    %233 = vector.broadcast %232 : vector<1x256xi1> to vector<8x256xi1>
    %234 = vector.broadcast %cst_141 : f32 to vector<8x256xf32>
    %235 = arith.select %233, %231, %234 : vector<8x256xi1>, vector<8x256xf32>
    %c7_142 = arith.constant 7 : index
    %c0_143 = arith.constant 0 : index
    %c0_144 = arith.constant 0 : index
    %236 = vector.load %arg9[%c7_142, %c0_143, %c0_144] : memref<25x8x8xf32, #tpu.memory_space<vmem>>, vector<1x8x8xf32>
    %237 = vector.shape_cast %236 : vector<1x8x8xf32> to vector<8x8xf32>
    %cst_145 = arith.constant dense<0.000000e+00> : vector<8x256xf32>
    %238 = tpu.matmul %237, %235, %cst_145 {dimension_numbers = #tpu.dot_dimension_numbers<[1], [0], [0], [1], [0, 0, 1, 1], [], []>} : vector<8x8xf32>, vector<8x256xf32>, vector<8x256xf32> -> vector<8x256xf32>
    %239 = arith.addf %230, %238 : vector<8x256xf32>
    %c0_146 = arith.constant 0 : index
    %c113_147 = arith.constant 113 : index
    %240 = vector.load %arg13[%c0_146, %c113_147] : memref<8x512xf32, #tpu.memory_space<vmem>>, vector<8x256xf32>
    %cst_148 = arith.constant 0.000000e+00 : f32
    %241 = vector.shape_cast %49 : vector<1x256xi1> to vector<1x256xi1>
    %242 = vector.broadcast %241 : vector<1x256xi1> to vector<8x256xi1>
    %243 = vector.broadcast %cst_148 : f32 to vector<8x256xf32>
    %244 = arith.select %242, %240, %243 : vector<8x256xi1>, vector<8x256xf32>
    %c8_149 = arith.constant 8 : index
    %c0_150 = arith.constant 0 : index
    %c0_151 = arith.constant 0 : index
    %245 = vector.load %arg9[%c8_149, %c0_150, %c0_151] : memref<25x8x8xf32, #tpu.memory_space<vmem>>, vector<1x8x8xf32>
    %246 = vector.shape_cast %245 : vector<1x8x8xf32> to vector<8x8xf32>
    %cst_152 = arith.constant dense<0.000000e+00> : vector<8x256xf32>
    %247 = tpu.matmul %246, %244, %cst_152 {dimension_numbers = #tpu.dot_dimension_numbers<[1], [0], [0], [1], [0, 0, 1, 1], [], []>} : vector<8x8xf32>, vector<8x256xf32>, vector<8x256xf32> -> vector<8x256xf32>
    %248 = arith.addf %239, %247 : vector<8x256xf32>
    %c0_153 = arith.constant 0 : index
    %c114 = arith.constant 114 : index
    %249 = vector.load %arg13[%c0_153, %c114] : memref<8x512xf32, #tpu.memory_space<vmem>>, vector<8x256xf32>
    %c1_i32_154 = arith.constant 1 : i32
    %250 = vector.broadcast %c1_i32_154 : i32 to vector<1x256xi32>
    %251 = arith.cmpi sge, %5, %250 : vector<1x256xi32>
    %c14_i32_155 = arith.constant 14 : i32
    %252 = vector.broadcast %c14_i32_155 : i32 to vector<1x256xi32>
    %253 = arith.cmpi slt, %7, %252 : vector<1x256xi32>
    %254 = arith.andi %251, %253 : vector<1x256xi1>
    %cst_156 = arith.constant 0.000000e+00 : f32
    %255 = vector.shape_cast %254 : vector<1x256xi1> to vector<1x256xi1>
    %256 = vector.broadcast %255 : vector<1x256xi1> to vector<8x256xi1>
    %257 = vector.broadcast %cst_156 : f32 to vector<8x256xf32>
    %258 = arith.select %256, %249, %257 : vector<8x256xi1>, vector<8x256xf32>
    %c9 = arith.constant 9 : index
    %c0_157 = arith.constant 0 : index
    %c0_158 = arith.constant 0 : index
    %259 = vector.load %arg9[%c9, %c0_157, %c0_158] : memref<25x8x8xf32, #tpu.memory_space<vmem>>, vector<1x8x8xf32>
    %260 = vector.shape_cast %259 : vector<1x8x8xf32> to vector<8x8xf32>
    %cst_159 = arith.constant dense<0.000000e+00> : vector<8x256xf32>
    %261 = tpu.matmul %260, %258, %cst_159 {dimension_numbers = #tpu.dot_dimension_numbers<[1], [0], [0], [1], [0, 0, 1, 1], [], []>} : vector<8x8xf32>, vector<8x256xf32>, vector<8x256xf32> -> vector<8x256xf32>
    %262 = arith.addf %248, %261 : vector<8x256xf32>
    %c0_160 = arith.constant 0 : index
    %c126 = arith.constant 126 : index
    %263 = vector.load %arg13[%c0_160, %c126] : memref<8x512xf32, #tpu.memory_space<vmem>>, vector<8x256xf32>
    %c2_i32_161 = arith.constant 2 : i32
    %264 = vector.broadcast %c2_i32_161 : i32 to vector<1x256xi32>
    %265 = arith.cmpi sge, %7, %264 : vector<1x256xi32>
    %cst_162 = arith.constant 0.000000e+00 : f32
    %266 = vector.shape_cast %265 : vector<1x256xi1> to vector<1x256xi1>
    %267 = vector.broadcast %266 : vector<1x256xi1> to vector<8x256xi1>
    %268 = vector.broadcast %cst_162 : f32 to vector<8x256xf32>
    %269 = arith.select %267, %263, %268 : vector<8x256xi1>, vector<8x256xf32>
    %c10 = arith.constant 10 : index
    %c0_163 = arith.constant 0 : index
    %c0_164 = arith.constant 0 : index
    %270 = vector.load %arg9[%c10, %c0_163, %c0_164] : memref<25x8x8xf32, #tpu.memory_space<vmem>>, vector<1x8x8xf32>
    %271 = vector.shape_cast %270 : vector<1x8x8xf32> to vector<8x8xf32>
    %cst_165 = arith.constant dense<0.000000e+00> : vector<8x256xf32>
    %272 = tpu.matmul %271, %269, %cst_165 {dimension_numbers = #tpu.dot_dimension_numbers<[1], [0], [0], [1], [0, 0, 1, 1], [], []>} : vector<8x8xf32>, vector<8x256xf32>, vector<8x256xf32> -> vector<8x256xf32>
    %273 = arith.addf %262, %272 : vector<8x256xf32>
    %c0_166 = arith.constant 0 : index
    %c127_167 = arith.constant 127 : index
    %274 = vector.load %arg13[%c0_166, %c127_167] : memref<8x512xf32, #tpu.memory_space<vmem>>, vector<8x256xf32>
    %cst_168 = arith.constant 0.000000e+00 : f32
    %275 = vector.shape_cast %60 : vector<1x256xi1> to vector<1x256xi1>
    %276 = vector.broadcast %275 : vector<1x256xi1> to vector<8x256xi1>
    %277 = vector.broadcast %cst_168 : f32 to vector<8x256xf32>
    %278 = arith.select %276, %274, %277 : vector<8x256xi1>, vector<8x256xf32>
    %c11 = arith.constant 11 : index
    %c0_169 = arith.constant 0 : index
    %c0_170 = arith.constant 0 : index
    %279 = vector.load %arg9[%c11, %c0_169, %c0_170] : memref<25x8x8xf32, #tpu.memory_space<vmem>>, vector<1x8x8xf32>
    %280 = vector.shape_cast %279 : vector<1x8x8xf32> to vector<8x8xf32>
    %cst_171 = arith.constant dense<0.000000e+00> : vector<8x256xf32>
    %281 = tpu.matmul %280, %278, %cst_171 {dimension_numbers = #tpu.dot_dimension_numbers<[1], [0], [0], [1], [0, 0, 1, 1], [], []>} : vector<8x8xf32>, vector<8x256xf32>, vector<8x256xf32> -> vector<8x256xf32>
    %282 = arith.addf %273, %281 : vector<8x256xf32>
    %c0_172 = arith.constant 0 : index
    %c128_173 = arith.constant 128 : index
    %283 = vector.load %arg13[%c0_172, %c128_173] : memref<8x512xf32, #tpu.memory_space<vmem>>, vector<8x256xf32>
    %c12 = arith.constant 12 : index
    %c0_174 = arith.constant 0 : index
    %c0_175 = arith.constant 0 : index
    %284 = vector.load %arg9[%c12, %c0_174, %c0_175] : memref<25x8x8xf32, #tpu.memory_space<vmem>>, vector<1x8x8xf32>
    %285 = vector.shape_cast %284 : vector<1x8x8xf32> to vector<8x8xf32>
    %cst_176 = arith.constant dense<0.000000e+00> : vector<8x256xf32>
    %286 = tpu.matmul %285, %283, %cst_176 {dimension_numbers = #tpu.dot_dimension_numbers<[1], [0], [0], [1], [0, 0, 1, 1], [], []>} : vector<8x8xf32>, vector<8x256xf32>, vector<8x256xf32> -> vector<8x256xf32>
    %287 = arith.addf %282, %286 : vector<8x256xf32>
    %c0_177 = arith.constant 0 : index
    %c129_178 = arith.constant 129 : index
    %288 = vector.load %arg13[%c0_177, %c129_178] : memref<8x512xf32, #tpu.memory_space<vmem>>, vector<8x256xf32>
    %cst_179 = arith.constant 0.000000e+00 : f32
    %289 = vector.shape_cast %76 : vector<1x256xi1> to vector<1x256xi1>
    %290 = vector.broadcast %289 : vector<1x256xi1> to vector<8x256xi1>
    %291 = vector.broadcast %cst_179 : f32 to vector<8x256xf32>
    %292 = arith.select %290, %288, %291 : vector<8x256xi1>, vector<8x256xf32>
    %c13 = arith.constant 13 : index
    %c0_180 = arith.constant 0 : index
    %c0_181 = arith.constant 0 : index
    %293 = vector.load %arg9[%c13, %c0_180, %c0_181] : memref<25x8x8xf32, #tpu.memory_space<vmem>>, vector<1x8x8xf32>
    %294 = vector.shape_cast %293 : vector<1x8x8xf32> to vector<8x8xf32>
    %cst_182 = arith.constant dense<0.000000e+00> : vector<8x256xf32>
    %295 = tpu.matmul %294, %292, %cst_182 {dimension_numbers = #tpu.dot_dimension_numbers<[1], [0], [0], [1], [0, 0, 1, 1], [], []>} : vector<8x8xf32>, vector<8x256xf32>, vector<8x256xf32> -> vector<8x256xf32>
    %296 = arith.addf %287, %295 : vector<8x256xf32>
    %c0_183 = arith.constant 0 : index
    %c130 = arith.constant 130 : index
    %297 = vector.load %arg13[%c0_183, %c130] : memref<8x512xf32, #tpu.memory_space<vmem>>, vector<8x256xf32>
    %c14_i32_184 = arith.constant 14 : i32
    %298 = vector.broadcast %c14_i32_184 : i32 to vector<1x256xi32>
    %299 = arith.cmpi slt, %7, %298 : vector<1x256xi32>
    %cst_185 = arith.constant 0.000000e+00 : f32
    %300 = vector.shape_cast %299 : vector<1x256xi1> to vector<1x256xi1>
    %301 = vector.broadcast %300 : vector<1x256xi1> to vector<8x256xi1>
    %302 = vector.broadcast %cst_185 : f32 to vector<8x256xf32>
    %303 = arith.select %301, %297, %302 : vector<8x256xi1>, vector<8x256xf32>
    %c14 = arith.constant 14 : index
    %c0_186 = arith.constant 0 : index
    %c0_187 = arith.constant 0 : index
    %304 = vector.load %arg9[%c14, %c0_186, %c0_187] : memref<25x8x8xf32, #tpu.memory_space<vmem>>, vector<1x8x8xf32>
    %305 = vector.shape_cast %304 : vector<1x8x8xf32> to vector<8x8xf32>
    %cst_188 = arith.constant dense<0.000000e+00> : vector<8x256xf32>
    %306 = tpu.matmul %305, %303, %cst_188 {dimension_numbers = #tpu.dot_dimension_numbers<[1], [0], [0], [1], [0, 0, 1, 1], [], []>} : vector<8x8xf32>, vector<8x256xf32>, vector<8x256xf32> -> vector<8x256xf32>
    %307 = arith.addf %296, %306 : vector<8x256xf32>
    %c0_189 = arith.constant 0 : index
    %c142 = arith.constant 142 : index
    %308 = vector.load %arg13[%c0_189, %c142] : memref<8x512xf32, #tpu.memory_space<vmem>>, vector<8x256xf32>
    %c15_i32_190 = arith.constant 15 : i32
    %309 = vector.broadcast %c15_i32_190 : i32 to vector<1x256xi32>
    %310 = arith.cmpi slt, %5, %309 : vector<1x256xi32>
    %c2_i32_191 = arith.constant 2 : i32
    %311 = vector.broadcast %c2_i32_191 : i32 to vector<1x256xi32>
    %312 = arith.cmpi sge, %7, %311 : vector<1x256xi32>
    %313 = arith.andi %310, %312 : vector<1x256xi1>
    %cst_192 = arith.constant 0.000000e+00 : f32
    %314 = vector.shape_cast %313 : vector<1x256xi1> to vector<1x256xi1>
    %315 = vector.broadcast %314 : vector<1x256xi1> to vector<8x256xi1>
    %316 = vector.broadcast %cst_192 : f32 to vector<8x256xf32>
    %317 = arith.select %315, %308, %316 : vector<8x256xi1>, vector<8x256xf32>
    %c15 = arith.constant 15 : index
    %c0_193 = arith.constant 0 : index
    %c0_194 = arith.constant 0 : index
    %318 = vector.load %arg9[%c15, %c0_193, %c0_194] : memref<25x8x8xf32, #tpu.memory_space<vmem>>, vector<1x8x8xf32>
    %319 = vector.shape_cast %318 : vector<1x8x8xf32> to vector<8x8xf32>
    %cst_195 = arith.constant dense<0.000000e+00> : vector<8x256xf32>
    %320 = tpu.matmul %319, %317, %cst_195 {dimension_numbers = #tpu.dot_dimension_numbers<[1], [0], [0], [1], [0, 0, 1, 1], [], []>} : vector<8x8xf32>, vector<8x256xf32>, vector<8x256xf32> -> vector<8x256xf32>
    %321 = arith.addf %307, %320 : vector<8x256xf32>
    %c0_196 = arith.constant 0 : index
    %c143_197 = arith.constant 143 : index
    %322 = vector.load %arg13[%c0_196, %c143_197] : memref<8x512xf32, #tpu.memory_space<vmem>>, vector<8x256xf32>
    %cst_198 = arith.constant 0.000000e+00 : f32
    %323 = vector.shape_cast %90 : vector<1x256xi1> to vector<1x256xi1>
    %324 = vector.broadcast %323 : vector<1x256xi1> to vector<8x256xi1>
    %325 = vector.broadcast %cst_198 : f32 to vector<8x256xf32>
    %326 = arith.select %324, %322, %325 : vector<8x256xi1>, vector<8x256xf32>
    %c16 = arith.constant 16 : index
    %c0_199 = arith.constant 0 : index
    %c0_200 = arith.constant 0 : index
    %327 = vector.load %arg9[%c16, %c0_199, %c0_200] : memref<25x8x8xf32, #tpu.memory_space<vmem>>, vector<1x8x8xf32>
    %328 = vector.shape_cast %327 : vector<1x8x8xf32> to vector<8x8xf32>
    %cst_201 = arith.constant dense<0.000000e+00> : vector<8x256xf32>
    %329 = tpu.matmul %328, %326, %cst_201 {dimension_numbers = #tpu.dot_dimension_numbers<[1], [0], [0], [1], [0, 0, 1, 1], [], []>} : vector<8x8xf32>, vector<8x256xf32>, vector<8x256xf32> -> vector<8x256xf32>
    %330 = arith.addf %321, %329 : vector<8x256xf32>
    %c0_202 = arith.constant 0 : index
    %c144_203 = arith.constant 144 : index
    %331 = vector.load %arg13[%c0_202, %c144_203] : memref<8x512xf32, #tpu.memory_space<vmem>>, vector<8x256xf32>
    %cst_204 = arith.constant 0.000000e+00 : f32
    %332 = vector.shape_cast %101 : vector<1x256xi1> to vector<1x256xi1>
    %333 = vector.broadcast %332 : vector<1x256xi1> to vector<8x256xi1>
    %334 = vector.broadcast %cst_204 : f32 to vector<8x256xf32>
    %335 = arith.select %333, %331, %334 : vector<8x256xi1>, vector<8x256xf32>
    %c17 = arith.constant 17 : index
    %c0_205 = arith.constant 0 : index
    %c0_206 = arith.constant 0 : index
    %336 = vector.load %arg9[%c17, %c0_205, %c0_206] : memref<25x8x8xf32, #tpu.memory_space<vmem>>, vector<1x8x8xf32>
    %337 = vector.shape_cast %336 : vector<1x8x8xf32> to vector<8x8xf32>
    %cst_207 = arith.constant dense<0.000000e+00> : vector<8x256xf32>
    %338 = tpu.matmul %337, %335, %cst_207 {dimension_numbers = #tpu.dot_dimension_numbers<[1], [0], [0], [1], [0, 0, 1, 1], [], []>} : vector<8x8xf32>, vector<8x256xf32>, vector<8x256xf32> -> vector<8x256xf32>
    %339 = arith.addf %330, %338 : vector<8x256xf32>
    %c0_208 = arith.constant 0 : index
    %c145_209 = arith.constant 145 : index
    %340 = vector.load %arg13[%c0_208, %c145_209] : memref<8x512xf32, #tpu.memory_space<vmem>>, vector<8x256xf32>
    %cst_210 = arith.constant 0.000000e+00 : f32
    %341 = vector.shape_cast %115 : vector<1x256xi1> to vector<1x256xi1>
    %342 = vector.broadcast %341 : vector<1x256xi1> to vector<8x256xi1>
    %343 = vector.broadcast %cst_210 : f32 to vector<8x256xf32>
    %344 = arith.select %342, %340, %343 : vector<8x256xi1>, vector<8x256xf32>
    %c18 = arith.constant 18 : index
    %c0_211 = arith.constant 0 : index
    %c0_212 = arith.constant 0 : index
    %345 = vector.load %arg9[%c18, %c0_211, %c0_212] : memref<25x8x8xf32, #tpu.memory_space<vmem>>, vector<1x8x8xf32>
    %346 = vector.shape_cast %345 : vector<1x8x8xf32> to vector<8x8xf32>
    %cst_213 = arith.constant dense<0.000000e+00> : vector<8x256xf32>
    %347 = tpu.matmul %346, %344, %cst_213 {dimension_numbers = #tpu.dot_dimension_numbers<[1], [0], [0], [1], [0, 0, 1, 1], [], []>} : vector<8x8xf32>, vector<8x256xf32>, vector<8x256xf32> -> vector<8x256xf32>
    %348 = arith.addf %339, %347 : vector<8x256xf32>
    %c0_214 = arith.constant 0 : index
    %c146 = arith.constant 146 : index
    %349 = vector.load %arg13[%c0_214, %c146] : memref<8x512xf32, #tpu.memory_space<vmem>>, vector<8x256xf32>
    %c15_i32_215 = arith.constant 15 : i32
    %350 = vector.broadcast %c15_i32_215 : i32 to vector<1x256xi32>
    %351 = arith.cmpi slt, %5, %350 : vector<1x256xi32>
    %c14_i32_216 = arith.constant 14 : i32
    %352 = vector.broadcast %c14_i32_216 : i32 to vector<1x256xi32>
    %353 = arith.cmpi slt, %7, %352 : vector<1x256xi32>
    %354 = arith.andi %351, %353 : vector<1x256xi1>
    %cst_217 = arith.constant 0.000000e+00 : f32
    %355 = vector.shape_cast %354 : vector<1x256xi1> to vector<1x256xi1>
    %356 = vector.broadcast %355 : vector<1x256xi1> to vector<8x256xi1>
    %357 = vector.broadcast %cst_217 : f32 to vector<8x256xf32>
    %358 = arith.select %356, %349, %357 : vector<8x256xi1>, vector<8x256xf32>
    %c19 = arith.constant 19 : index
    %c0_218 = arith.constant 0 : index
    %c0_219 = arith.constant 0 : index
    %359 = vector.load %arg9[%c19, %c0_218, %c0_219] : memref<25x8x8xf32, #tpu.memory_space<vmem>>, vector<1x8x8xf32>
    %360 = vector.shape_cast %359 : vector<1x8x8xf32> to vector<8x8xf32>
    %cst_220 = arith.constant dense<0.000000e+00> : vector<8x256xf32>
    %361 = tpu.matmul %360, %358, %cst_220 {dimension_numbers = #tpu.dot_dimension_numbers<[1], [0], [0], [1], [0, 0, 1, 1], [], []>} : vector<8x8xf32>, vector<8x256xf32>, vector<8x256xf32> -> vector<8x256xf32>
    %362 = arith.addf %348, %361 : vector<8x256xf32>
    %c0_221 = arith.constant 0 : index
    %c158 = arith.constant 158 : index
    %363 = vector.load %arg13[%c0_221, %c158] : memref<8x512xf32, #tpu.memory_space<vmem>>, vector<8x256xf32>
    %c14_i32_222 = arith.constant 14 : i32
    %364 = vector.broadcast %c14_i32_222 : i32 to vector<1x256xi32>
    %365 = arith.cmpi slt, %5, %364 : vector<1x256xi32>
    %c2_i32_223 = arith.constant 2 : i32
    %366 = vector.broadcast %c2_i32_223 : i32 to vector<1x256xi32>
    %367 = arith.cmpi sge, %7, %366 : vector<1x256xi32>
    %368 = arith.andi %365, %367 : vector<1x256xi1>
    %cst_224 = arith.constant 0.000000e+00 : f32
    %369 = vector.shape_cast %368 : vector<1x256xi1> to vector<1x256xi1>
    %370 = vector.broadcast %369 : vector<1x256xi1> to vector<8x256xi1>
    %371 = vector.broadcast %cst_224 : f32 to vector<8x256xf32>
    %372 = arith.select %370, %363, %371 : vector<8x256xi1>, vector<8x256xf32>
    %c20 = arith.constant 20 : index
    %c0_225 = arith.constant 0 : index
    %c0_226 = arith.constant 0 : index
    %373 = vector.load %arg9[%c20, %c0_225, %c0_226] : memref<25x8x8xf32, #tpu.memory_space<vmem>>, vector<1x8x8xf32>
    %374 = vector.shape_cast %373 : vector<1x8x8xf32> to vector<8x8xf32>
    %cst_227 = arith.constant dense<0.000000e+00> : vector<8x256xf32>
    %375 = tpu.matmul %374, %372, %cst_227 {dimension_numbers = #tpu.dot_dimension_numbers<[1], [0], [0], [1], [0, 0, 1, 1], [], []>} : vector<8x8xf32>, vector<8x256xf32>, vector<8x256xf32> -> vector<8x256xf32>
    %376 = arith.addf %362, %375 : vector<8x256xf32>
    %c0_228 = arith.constant 0 : index
    %c159 = arith.constant 159 : index
    %377 = vector.load %arg13[%c0_228, %c159] : memref<8x512xf32, #tpu.memory_space<vmem>>, vector<8x256xf32>
    %c14_i32_229 = arith.constant 14 : i32
    %378 = vector.broadcast %c14_i32_229 : i32 to vector<1x256xi32>
    %379 = arith.cmpi slt, %5, %378 : vector<1x256xi32>
    %c1_i32_230 = arith.constant 1 : i32
    %380 = vector.broadcast %c1_i32_230 : i32 to vector<1x256xi32>
    %381 = arith.cmpi sge, %7, %380 : vector<1x256xi32>
    %382 = arith.andi %379, %381 : vector<1x256xi1>
    %cst_231 = arith.constant 0.000000e+00 : f32
    %383 = vector.shape_cast %382 : vector<1x256xi1> to vector<1x256xi1>
    %384 = vector.broadcast %383 : vector<1x256xi1> to vector<8x256xi1>
    %385 = vector.broadcast %cst_231 : f32 to vector<8x256xf32>
    %386 = arith.select %384, %377, %385 : vector<8x256xi1>, vector<8x256xf32>
    %c21 = arith.constant 21 : index
    %c0_232 = arith.constant 0 : index
    %c0_233 = arith.constant 0 : index
    %387 = vector.load %arg9[%c21, %c0_232, %c0_233] : memref<25x8x8xf32, #tpu.memory_space<vmem>>, vector<1x8x8xf32>
    %388 = vector.shape_cast %387 : vector<1x8x8xf32> to vector<8x8xf32>
    %cst_234 = arith.constant dense<0.000000e+00> : vector<8x256xf32>
    %389 = tpu.matmul %388, %386, %cst_234 {dimension_numbers = #tpu.dot_dimension_numbers<[1], [0], [0], [1], [0, 0, 1, 1], [], []>} : vector<8x8xf32>, vector<8x256xf32>, vector<8x256xf32> -> vector<8x256xf32>
    %390 = arith.addf %376, %389 : vector<8x256xf32>
    %c0_235 = arith.constant 0 : index
    %c160 = arith.constant 160 : index
    %391 = vector.load %arg13[%c0_235, %c160] : memref<8x512xf32, #tpu.memory_space<vmem>>, vector<8x256xf32>
    %c14_i32_236 = arith.constant 14 : i32
    %392 = vector.broadcast %c14_i32_236 : i32 to vector<1x256xi32>
    %393 = arith.cmpi slt, %5, %392 : vector<1x256xi32>
    %cst_237 = arith.constant 0.000000e+00 : f32
    %394 = vector.shape_cast %393 : vector<1x256xi1> to vector<1x256xi1>
    %395 = vector.broadcast %394 : vector<1x256xi1> to vector<8x256xi1>
    %396 = vector.broadcast %cst_237 : f32 to vector<8x256xf32>
    %397 = arith.select %395, %391, %396 : vector<8x256xi1>, vector<8x256xf32>
    %c22 = arith.constant 22 : index
    %c0_238 = arith.constant 0 : index
    %c0_239 = arith.constant 0 : index
    %398 = vector.load %arg9[%c22, %c0_238, %c0_239] : memref<25x8x8xf32, #tpu.memory_space<vmem>>, vector<1x8x8xf32>
    %399 = vector.shape_cast %398 : vector<1x8x8xf32> to vector<8x8xf32>
    %cst_240 = arith.constant dense<0.000000e+00> : vector<8x256xf32>
    %400 = tpu.matmul %399, %397, %cst_240 {dimension_numbers = #tpu.dot_dimension_numbers<[1], [0], [0], [1], [0, 0, 1, 1], [], []>} : vector<8x8xf32>, vector<8x256xf32>, vector<8x256xf32> -> vector<8x256xf32>
    %401 = arith.addf %390, %400 : vector<8x256xf32>
    %c0_241 = arith.constant 0 : index
    %c161 = arith.constant 161 : index
    %402 = vector.load %arg13[%c0_241, %c161] : memref<8x512xf32, #tpu.memory_space<vmem>>, vector<8x256xf32>
    %c14_i32_242 = arith.constant 14 : i32
    %403 = vector.broadcast %c14_i32_242 : i32 to vector<1x256xi32>
    %404 = arith.cmpi slt, %5, %403 : vector<1x256xi32>
    %c15_i32_243 = arith.constant 15 : i32
    %405 = vector.broadcast %c15_i32_243 : i32 to vector<1x256xi32>
    %406 = arith.cmpi slt, %7, %405 : vector<1x256xi32>
    %407 = arith.andi %404, %406 : vector<1x256xi1>
    %cst_244 = arith.constant 0.000000e+00 : f32
    %408 = vector.shape_cast %407 : vector<1x256xi1> to vector<1x256xi1>
    %409 = vector.broadcast %408 : vector<1x256xi1> to vector<8x256xi1>
    %410 = vector.broadcast %cst_244 : f32 to vector<8x256xf32>
    %411 = arith.select %409, %402, %410 : vector<8x256xi1>, vector<8x256xf32>
    %c23 = arith.constant 23 : index
    %c0_245 = arith.constant 0 : index
    %c0_246 = arith.constant 0 : index
    %412 = vector.load %arg9[%c23, %c0_245, %c0_246] : memref<25x8x8xf32, #tpu.memory_space<vmem>>, vector<1x8x8xf32>
    %413 = vector.shape_cast %412 : vector<1x8x8xf32> to vector<8x8xf32>
    %cst_247 = arith.constant dense<0.000000e+00> : vector<8x256xf32>
    %414 = tpu.matmul %413, %411, %cst_247 {dimension_numbers = #tpu.dot_dimension_numbers<[1], [0], [0], [1], [0, 0, 1, 1], [], []>} : vector<8x8xf32>, vector<8x256xf32>, vector<8x256xf32> -> vector<8x256xf32>
    %415 = arith.addf %401, %414 : vector<8x256xf32>
    %c0_248 = arith.constant 0 : index
    %c162 = arith.constant 162 : index
    %416 = vector.load %arg13[%c0_248, %c162] : memref<8x512xf32, #tpu.memory_space<vmem>>, vector<8x256xf32>
    %c14_i32_249 = arith.constant 14 : i32
    %417 = vector.broadcast %c14_i32_249 : i32 to vector<1x256xi32>
    %418 = arith.cmpi slt, %5, %417 : vector<1x256xi32>
    %c14_i32_250 = arith.constant 14 : i32
    %419 = vector.broadcast %c14_i32_250 : i32 to vector<1x256xi32>
    %420 = arith.cmpi slt, %7, %419 : vector<1x256xi32>
    %421 = arith.andi %418, %420 : vector<1x256xi1>
    %cst_251 = arith.constant 0.000000e+00 : f32
    %422 = vector.shape_cast %421 : vector<1x256xi1> to vector<1x256xi1>
    %423 = vector.broadcast %422 : vector<1x256xi1> to vector<8x256xi1>
    %424 = vector.broadcast %cst_251 : f32 to vector<8x256xf32>
    %425 = arith.select %423, %416, %424 : vector<8x256xi1>, vector<8x256xf32>
    %c24 = arith.constant 24 : index
    %c0_252 = arith.constant 0 : index
    %c0_253 = arith.constant 0 : index
    %426 = vector.load %arg9[%c24, %c0_252, %c0_253] : memref<25x8x8xf32, #tpu.memory_space<vmem>>, vector<1x8x8xf32>
    %427 = vector.shape_cast %426 : vector<1x8x8xf32> to vector<8x8xf32>
    %cst_254 = arith.constant dense<0.000000e+00> : vector<8x256xf32>
    %428 = tpu.matmul %427, %425, %cst_254 {dimension_numbers = #tpu.dot_dimension_numbers<[1], [0], [0], [1], [0, 0, 1, 1], [], []>} : vector<8x8xf32>, vector<8x256xf32>, vector<8x256xf32> -> vector<8x256xf32>
    %429 = arith.addf %415, %428 : vector<8x256xf32>
    %c0_255 = arith.constant 0 : index
    %c0_256 = arith.constant 0 : index
    %430 = vector.load %arg10[%c0_255, %c0_256] : memref<8x1xf32, #tpu.memory_space<vmem>>, vector<8x1xf32>
    %431 = vector.broadcast %430 : vector<8x1xf32> to vector<8x256xf32>
    %432 = arith.addf %429, %431 : vector<8x256xf32>
    %cst_257 = arith.constant 0.000000e+00 : f32
    %433 = vector.broadcast %cst_257 : f32 to vector<8x256xf32>
    %434 = arith.maximumf %432, %433 : vector<8x256xf32>
    %cst_258 = arith.constant dense<0.000000e+00> : vector<8x64xf32>
    %435 = tpu.matmul %434, %2, %cst_258 {dimension_numbers = #tpu.dot_dimension_numbers<[1], [0], [0], [1], [0, 0, 1, 1], [], []>} : vector<8x256xf32>, vector<256x64xf32>, vector<8x64xf32> -> vector<8x64xf32>
    %cst_259 = arith.constant 0.000000e+00 : f32
    %436 = vector.broadcast %cst_259 : f32 to vector<4x512xf32>
    %c0_260 = arith.constant 0 : index
    %c0_261 = arith.constant 0 : index
    %437 = vector.load %arg14[%c0_260, %c0_261] : memref<4x512xf32, #tpu.memory_space<vmem>>, vector<4x512xf32>
    tpu.vector_store %arg14[%c0_260, %c0_261], %436 {strides = array<i32>} : memref<4x512xf32, #tpu.memory_space<vmem>>, vector<4x512xf32>,
    %c0_262 = arith.constant 0 : index
    %c128_263 = arith.constant 128 : index
    %438 = vector.load %arg14[%c0_262, %c128_263] : memref<4x512xf32, #tpu.memory_space<vmem>>, vector<4x256xf32>
    tpu.vector_store %arg14[%c0_262, %c128_263], %1 {strides = array<i32>} : memref<4x512xf32, #tpu.memory_space<vmem>>, vector<4x256xf32>,
    %c0_264 = arith.constant 0 : index
    %c111_265 = arith.constant 111 : index
    %439 = vector.load %arg14[%c0_264, %c111_265] : memref<4x512xf32, #tpu.memory_space<vmem>>, vector<4x256xf32>
    %cst_266 = arith.constant -3.000000e+38 : f32
    %440 = vector.shape_cast %24 : vector<1x256xi1> to vector<1x256xi1>
    %441 = vector.broadcast %440 : vector<1x256xi1> to vector<4x256xi1>
    %442 = vector.broadcast %cst_266 : f32 to vector<4x256xf32>
    %443 = arith.select %441, %439, %442 : vector<4x256xi1>, vector<4x256xf32>
    %444 = arith.maximumf %1, %443 : vector<4x256xf32>
    %c0_267 = arith.constant 0 : index
    %c112_268 = arith.constant 112 : index
    %445 = vector.load %arg14[%c0_267, %c112_268] : memref<4x512xf32, #tpu.memory_space<vmem>>, vector<4x256xf32>
    %cst_269 = arith.constant -3.000000e+38 : f32
    %446 = vector.shape_cast %35 : vector<1x256xi1> to vector<1x256xi1>
    %447 = vector.broadcast %446 : vector<1x256xi1> to vector<4x256xi1>
    %448 = vector.broadcast %cst_269 : f32 to vector<4x256xf32>
    %449 = arith.select %447, %445, %448 : vector<4x256xi1>, vector<4x256xf32>
    %450 = arith.maximumf %444, %449 : vector<4x256xf32>
    %c0_270 = arith.constant 0 : index
    %c113_271 = arith.constant 113 : index
    %451 = vector.load %arg14[%c0_270, %c113_271] : memref<4x512xf32, #tpu.memory_space<vmem>>, vector<4x256xf32>
    %cst_272 = arith.constant -3.000000e+38 : f32
    %452 = vector.shape_cast %49 : vector<1x256xi1> to vector<1x256xi1>
    %453 = vector.broadcast %452 : vector<1x256xi1> to vector<4x256xi1>
    %454 = vector.broadcast %cst_272 : f32 to vector<4x256xf32>
    %455 = arith.select %453, %451, %454 : vector<4x256xi1>, vector<4x256xf32>
    %456 = arith.maximumf %450, %455 : vector<4x256xf32>
    %c0_273 = arith.constant 0 : index
    %c127_274 = arith.constant 127 : index
    %457 = vector.load %arg14[%c0_273, %c127_274] : memref<4x512xf32, #tpu.memory_space<vmem>>, vector<4x256xf32>
    %cst_275 = arith.constant -3.000000e+38 : f32
    %458 = vector.shape_cast %60 : vector<1x256xi1> to vector<1x256xi1>
    %459 = vector.broadcast %458 : vector<1x256xi1> to vector<4x256xi1>
    %460 = vector.broadcast %cst_275 : f32 to vector<4x256xf32>
    %461 = arith.select %459, %457, %460 : vector<4x256xi1>, vector<4x256xf32>
    %462 = arith.maximumf %456, %461 : vector<4x256xf32>
    %c0_276 = arith.constant 0 : index
    %c129_277 = arith.constant 129 : index
    %463 = vector.load %arg14[%c0_276, %c129_277] : memref<4x512xf32, #tpu.memory_space<vmem>>, vector<4x256xf32>
    %cst_278 = arith.constant -3.000000e+38 : f32
    %464 = vector.shape_cast %76 : vector<1x256xi1> to vector<1x256xi1>
    %465 = vector.broadcast %464 : vector<1x256xi1> to vector<4x256xi1>
    %466 = vector.broadcast %cst_278 : f32 to vector<4x256xf32>
    %467 = arith.select %465, %463, %466 : vector<4x256xi1>, vector<4x256xf32>
    %468 = arith.maximumf %462, %467 : vector<4x256xf32>
    %c0_279 = arith.constant 0 : index
    %c143_280 = arith.constant 143 : index
    %469 = vector.load %arg14[%c0_279, %c143_280] : memref<4x512xf32, #tpu.memory_space<vmem>>, vector<4x256xf32>
    %cst_281 = arith.constant -3.000000e+38 : f32
    %470 = vector.shape_cast %90 : vector<1x256xi1> to vector<1x256xi1>
    %471 = vector.broadcast %470 : vector<1x256xi1> to vector<4x256xi1>
    %472 = vector.broadcast %cst_281 : f32 to vector<4x256xf32>
    %473 = arith.select %471, %469, %472 : vector<4x256xi1>, vector<4x256xf32>
    %474 = arith.maximumf %468, %473 : vector<4x256xf32>
    %c0_282 = arith.constant 0 : index
    %c144_283 = arith.constant 144 : index
    %475 = vector.load %arg14[%c0_282, %c144_283] : memref<4x512xf32, #tpu.memory_space<vmem>>, vector<4x256xf32>
    %cst_284 = arith.constant -3.000000e+38 : f32
    %476 = vector.shape_cast %101 : vector<1x256xi1> to vector<1x256xi1>
    %477 = vector.broadcast %476 : vector<1x256xi1> to vector<4x256xi1>
    %478 = vector.broadcast %cst_284 : f32 to vector<4x256xf32>
    %479 = arith.select %477, %475, %478 : vector<4x256xi1>, vector<4x256xf32>
    %480 = arith.maximumf %474, %479 : vector<4x256xf32>
    %c0_285 = arith.constant 0 : index
    %c145_286 = arith.constant 145 : index
    %481 = vector.load %arg14[%c0_285, %c145_286] : memref<4x512xf32, #tpu.memory_space<vmem>>, vector<4x256xf32>
    %cst_287 = arith.constant -3.000000e+38 : f32
    %482 = vector.shape_cast %115 : vector<1x256xi1> to vector<1x256xi1>
    %483 = vector.broadcast %482 : vector<1x256xi1> to vector<4x256xi1>
    %484 = vector.broadcast %cst_287 : f32 to vector<4x256xf32>
    %485 = arith.select %483, %481, %484 : vector<4x256xi1>, vector<4x256xf32>
    %486 = arith.maximumf %480, %485 : vector<4x256xf32>
    %cst_288 = arith.constant dense<0.000000e+00> : vector<4x64xf32>
    %487 = tpu.matmul %486, %2, %cst_288 {dimension_numbers = #tpu.dot_dimension_numbers<[1], [0], [0], [1], [0, 0, 1, 1], [], []>} : vector<4x256xf32>, vector<256x64xf32>, vector<4x64xf32> -> vector<4x64xf32>
    %c0_289 = arith.constant 0 : index
    %c0_290 = arith.constant 0 : index
    %c0_291 = arith.constant 0 : index
    %488 = vector.load %arg11[%c0_289, %c0_290, %c0_291] : memref<1x20x64xf32, #tpu.memory_space<vmem>>, vector<1x8x64xf32>
    %489 = vector.shape_cast %488 : vector<1x8x64xf32> to vector<8x64xf32>
    %490 = vector.shape_cast %129 : vector<8x64xf32> to vector<1x8x64xf32>
    tpu.vector_store %arg11[%c0_289, %c0_290, %c0_291], %490 {strides = array<i32>} : memref<1x20x64xf32, #tpu.memory_space<vmem>>, vector<1x8x64xf32>,
    %c0_292 = arith.constant 0 : index
    %c8_293 = arith.constant 8 : index
    %c0_294 = arith.constant 0 : index
    %491 = vector.load %arg11[%c0_292, %c8_293, %c0_294] : memref<1x20x64xf32, #tpu.memory_space<vmem>>, vector<1x8x64xf32>
    %492 = vector.shape_cast %491 : vector<1x8x64xf32> to vector<8x64xf32>
    %493 = vector.shape_cast %435 : vector<8x64xf32> to vector<1x8x64xf32>
    tpu.vector_store %arg11[%c0_292, %c8_293, %c0_294], %493 {strides = array<i32>} : memref<1x20x64xf32, #tpu.memory_space<vmem>>, vector<1x8x64xf32>,
    %c0_295 = arith.constant 0 : index
    %c16_296 = arith.constant 16 : index
    %c0_297 = arith.constant 0 : index
    %494 = vector.load %arg11[%c0_295, %c16_296, %c0_297] : memref<1x20x64xf32, #tpu.memory_space<vmem>>, vector<1x4x64xf32>
    %495 = vector.shape_cast %494 : vector<1x4x64xf32> to vector<4x64xf32>
    %496 = vector.shape_cast %487 : vector<4x64xf32> to vector<1x4x64xf32>
    tpu.vector_store %arg11[%c0_295, %c16_296, %c0_297], %496 {strides = array<i32>} : memref<1x20x64xf32, #tpu.memory_space<vmem>>, vector<1x4x64xf32>,
    return
  }
  func.func @transform_0(%arg0: i32) -> (i32, i32) {
    %c0_i32 = arith.constant 0 : i32
    %c0_i32_0 = arith.constant 0 : i32
    %c0_i32_1 = arith.constant 0 : i32
    return %c0_i32, %c0_i32_0 : i32, i32
  }
  func.func @transform_1(%arg0: i32) -> (i32, i32, i32) {
    %c0_i32 = arith.constant 0 : i32
    %c0_i32_0 = arith.constant 0 : i32
    %c0_i32_1 = arith.constant 0 : i32
    return %arg0, %c0_i32, %c0_i32_0 : i32, i32, i32
  }
  func.func @transform_2(%arg0: i32) -> (i32, i32) {
    %c0_i32 = arith.constant 0 : i32
    %c0_i32_0 = arith.constant 0 : i32
    %c0_i32_1 = arith.constant 0 : i32
    return %c0_i32, %c0_i32_0 : i32, i32
  }
  func.func @transform_3(%arg0: i32) -> (i32, i32) {
    %c0_i32 = arith.constant 0 : i32
    %c0_i32_0 = arith.constant 0 : i32
    %c0_i32_1 = arith.constant 0 : i32
    return %c0_i32, %c0_i32_0 : i32, i32
  }
  func.func @transform_4(%arg0: i32) -> (i32, i32, i32) {
    %c0_i32 = arith.constant 0 : i32
    %c0_i32_0 = arith.constant 0 : i32
    %c0_i32_1 = arith.constant 0 : i32
    %c0_i32_2 = arith.constant 0 : i32
    return %c0_i32, %c0_i32_0, %c0_i32_1 : i32, i32, i32
  }
  func.func @transform_5(%arg0: i32) -> (i32, i32) {
    %c0_i32 = arith.constant 0 : i32
    %c0_i32_0 = arith.constant 0 : i32
    %c0_i32_1 = arith.constant 0 : i32
    return %c0_i32, %c0_i32_0 : i32, i32
  }
  func.func @transform_6(%arg0: i32) -> (i32, i32) {
    %c0_i32 = arith.constant 0 : i32
    %c0_i32_0 = arith.constant 0 : i32
    %c0_i32_1 = arith.constant 0 : i32
    return %c0_i32, %c0_i32_0 : i32, i32
  }
  func.func @transform_7(%arg0: i32) -> (i32, i32) {
    %c0_i32 = arith.constant 0 : i32
    %c0_i32_0 = arith.constant 0 : i32
    %c0_i32_1 = arith.constant 0 : i32
    return %c0_i32, %c0_i32_0 : i32, i32
  }
  func.func @transform_8(%arg0: i32) -> (i32, i32, i32) {
    %c0_i32 = arith.constant 0 : i32
    %c0_i32_0 = arith.constant 0 : i32
    %c0_i32_1 = arith.constant 0 : i32
    %c0_i32_2 = arith.constant 0 : i32
    return %c0_i32, %c0_i32_0, %c0_i32_1 : i32, i32, i32
  }
  func.func @transform_9(%arg0: i32) -> (i32, i32) {
    %c0_i32 = arith.constant 0 : i32
    %c0_i32_0 = arith.constant 0 : i32
    %c0_i32_1 = arith.constant 0 : i32
    return %c0_i32, %c0_i32_0 : i32, i32
  }
  func.func @transform_10(%arg0: i32) -> (i32, i32, i32) {
    %c0_i32 = arith.constant 0 : i32
    %c0_i32_0 = arith.constant 0 : i32
    %c0_i32_1 = arith.constant 0 : i32
    return %arg0, %c0_i32, %c0_i32_0 : i32, i32, i32
  }
}

</mosaic_0001>

<bundles_post_ra>
// kernel: inception_block_transition.1
= control target key start
LH: loop header
LB: loop body
LE: loop exit
PB: predicated region body
PF: predicated region fallthrough
CT: control target
= control target key end

     0   :  { %s4789_s13 = smov 0   ;;  %s5722_s0 = inlined_call_operand.vmem [shape: f32[256,64], index: 0, kind: input, shape index: {}]   ;;  %s5723_s1 = inlined_call_operand.vmem [shape: f32[2,4,256], index: 1, kind: input, shape index: {}]   ;;  %s5724_s2 = inlined_call_operand.vmem [shape: f32[8,4], index: 2, kind: input, shape index: {}]   ;;  %s5725_s3 = inlined_call_operand.vmem [shape: f32[8,1], index: 3, kind: input, shape index: {}]   ;;  %s5726_s4 = inlined_call_operand.vmem [shape: f32[9,8,8], index: 4, kind: input, shape index: {}]   ;;  %s5727_s5 = inlined_call_operand.vmem [shape: f32[8,1], index: 5, kind: input, shape index: {}]   ;;  %s5728_s6 = inlined_call_operand.vmem [shape: f32[8,4], index: 6, kind: input, shape index: {}]   ;;  %s5729_s7 = inlined_call_operand.vmem [shape: f32[8,1], index: 7, kind: input, shape index: {}]   ;;  %s5730_s8 = inlined_call_operand.vmem [shape: f32[25,8,8], index: 8, kind: input, shape index: {}]   ;;  %s5731_s9 = inlined_call_operand.vmem [shape: f32[8,1], index: 9, kind: input, shape index: {}]   ;;  %s5732_s10 = inlined_call_operand.vmem [shape: f32[2,20,64], index: 10, kind: output, shape index: {}]  }
   0x1 LB: > { %s4247_s14 = sadd.s32 4294967295, %s4706_s13   ;;  %p4251_p0 = scmp.ge.s32.totalorder %s4706_s13, 1  ;;  %s4706_s13 = sphi %s4789_s13, %s20_s13  }
   0x2   : > { %p312_p1 = scmp.lt.s32.totalorder %s4706_s13, 3 }
   0x4   : > { %p313_p2 = pnand %p4251_p0, %p312_p1 }
   0x5   : > { %p350_p3 = scmp.lt.s32.totalorder (!%p313_p2), %s4247_s14, 1  ;;  %v4708_v0 = vmov (!%p313_p2), 0.0   ;;  %v4709_v1 = vmov (!%p313_p2), 0   ;;  %v401_v2 = vld [vmem:[%s5725_s3] sm:$0xff] (!%p313_p2)  ;;  %s4710_s17 = smov (!%p313_p2), 16   ;;  %vm5738_vm0 = vcmask (!%p313_p2), 1043456   ;;  %v393_v16 = vlaneseq (!%p313_p2) }
   0x6   : > { %316 = sbr.rel (%p313_p2) target bundleno = 1609 (0x649), region = 60  ;;  %3965 = vst [vmem:[#allocation4] sm:$0xff] (!%p313_p2), %v4708_v0  ;;  %3966 = vst [vmem:[#allocation4 + $0x8] sm:$0xff] (!%p313_p2), %v4708_v0  ;;  %482 = vmatprep.mubr.f32.mxu0 (!%p313_p2), %v4708_v0  ;;  %4694 = vset.pattern.permute.xlu0 (!%p313_p2), %v4709_v1  ;;  %s4711_s22 = smov (!%p313_p2), 127   ;;  %v400_v5 = vld [vmem:[%s5724_s2] sm:$0xff] (!%p313_p2)  ;;  %vm5735_vm1 = vcmask (!%p313_p2), 31744  }
   0x7   : > { %404 = vperm.xlu0 (!%p313_p2), %4694, %v401_v2   ;;  %531 = vrot.lane.b32.xlu1 (!%p313_p2), %v4708_v0, %s4710_s17  ;;  %s4712_s25 = smov (!%p313_p2), 17   ;;  %s4713_s26 = smov (!%p313_p2), 113   ;;  %vm5762_vm2 = vcmask (!%p313_p2), 64512   ;;  %v4273_v13 = vld [vmem:[%s5726_s4 + $0x20] sm:$0xff] (!%p313_p2)  ;;  %v394_v19 = vand.u32 (!%p313_p2), 127, %v393_v16  ;;  %vm5734_vm3 = vcmask (!%p313_p2), 130048  }
   0x8   : > { %958 = vmatprep.mubr.f32.mxu1 (!%p313_p2), %v4708_v0  ;;  %4695 = vset.pattern.permute.xlu1 (!%p313_p2), %v4709_v1  ;;  %s4714_s29 = smov (!%p313_p2), 15   ;;  %s4715_s30 = smov (!%p313_p2), 112   ;;  %v1440_v14 = vld [vmem:[%s5729_s7] sm:$0xff] (!%p313_p2)  ;;  %v4258_v32 = vld [vmem:[%s5726_s4 + $0x8] sm:$0xff] (!%p313_p2)  ;;  %vm5733_vm6 = vcmask (!%p313_p2), 1039360   ;;  %vm5736_vm14 = vcmask (!%p313_p2), 924672  }
   0x9   : > { %s4716_s11 = smov (!%p313_p2), 1   ;;  %s4717_s12 = smov (!%p313_p2), 111   ;;  %v1359_v15 = vld [vmem:[%s5727_s5] sm:$0xff] (!%p313_p2)  ;;  %v395_v22 = vadd.s32 (!%p313_p2), 128, %v394_v19  ;;  %v4871_v26 = vshra.s32 (!%p313_p2), %v394_v19, 4  ;;  %v4877_v30 = vand.u32 (!%p313_p2), 15, %v394_v19 }
   0xa   : > { %v4275_v38 = vld [vmem:[%s5726_s4 + $0x28] sm:$0xff] (!%p313_p2)  ;;  %v526_v50 = vld [vmem:[%s5726_s4] sm:$0xff] (!%p313_p2)  ;;  %v4279_v51 = vld [vmem:[%s5726_s4 + $0x30] sm:$0xff] (!%p313_p2)  ;;  %s4719_s15 = smov (!%p313_p2), 34   ;;  %s4720_s16 = smov (!%p313_p2), 32  }
   0xb   : > { %981 = vrot.lane.b32.xlu0 (!%p313_p2), %v4708_v0, %s4711_s22  ;;  %513 = vrot.lane.b32.xlu1 (!%p313_p2), %v4708_v0, %s4712_s25  ;;  %v4869_v23 = vshra.s32 (!%p313_p2), %v395_v22, 4  ;;  %v4874_v27 = vand.u32 (!%p313_p2), 15, %v395_v22  ;;  %vm5742_vm5 = vcmp.ge.s32.totalorder (!%p313_p2), %v4871_v26, 1  ;;  %vm5749_vm8 = vcmp.lt.s32.totalorder (!%p313_p2), %v4877_v30, 15  ;;  %v4265_v62 = vld [vmem:[%s5726_s4 + $0x10] sm:$0xff] (!%p313_p2)  ;;  %v4283_v63 = vld [vmem:[%s5726_s4 + $0x38] sm:$0xff] (!%p313_p2) }
   0xc   : > { %vm5739_vm11 = vcmp.ge.s32.totalorder (!%p313_p2), %v4877_v30, 1  ;;  %vm5744_vm13 = vcmp.lt.s32.totalorder (!%p313_p2), %v4871_v26, 15  ;;  %v379_v16 = vld [vmem:[%s5722_s0 + $0x90] sm:$0xff] (!%p313_p2)  ;;  %s4722_s19 = smov (!%p313_p2), 30   ;;  %s4723_s20 = smov (!%p313_p2), 18  }
   0xd   : > { %s5882_s14 = smov (!%p350_p3, %s4247_s14), 1  ;;  %vm5748_vm4 = vcmp.ge.s32.totalorder %v4869_v23, 1  ;;  %vm5750_vm7 = vcmp.lt.s32.totalorder %v4874_v27, 15  ;;  %vm5751_vm9 = vcmp.ge.s32.totalorder %v4874_v27, 1  ;;  %vm5743_vm10 = vcmp.lt.s32.totalorder %v4869_v23, 15  ;;  %s4726_s24 = smov 126  }
   0xe   : > { %s4393_s18 = sshll.u32 %s5882_s14, 3  ;;  %vm4909_vm12 = vmand %vm5748_vm4, %vm5751_vm9  ;;  %s4659_s23 = smul.u32 24, %s5882_s14 }
   0xf   : > { %s354_s21 = scalar_lea.vmem %s5723_s1, %s4393_s18  ;;  %1080 = vrot.lane.b32.xlu0 %v4708_v0, %s4713_s26  ;;  %vm4919_vm15 = vmand %vm5743_vm10, %vm5751_vm9  ;;  %s4718_s14 = smov 33  }
  0x10   : > { %v4812_v3 = vld [vmem:[%s354_s21] sm:$0xff]  ;;  %s5210_s28 = scalar_lea.vmem %s5732_s10, %s4659_s23  ;;  %s4721_s18 = smov 31  }
  0x11   : > { %v4818_v4 = vcombine.high %v4812_v3, %v4812_v3  ;;  %3967 = vst [vmem:[#allocation4 + $0x4] sm:$0xff] %v4812_v3  ;;  %s4724_s21 = smov 14   ;;  %s4725_s23 = smov 2  }
  0x12   : > { %s4727_s27 = smov 114  }
  0x13   : > { %4255 = vmatprep.subr.msk.mxu0 %vm5738_vm0, %v4818_v4 }
  0x14   : > { %4256 = vmatpush1.msk.msra.mxu0 %vm5738_vm0, %v4812_v3  ;;  %vm4965_vm0 = vmand %vm5748_vm4, %vm5750_vm7 }
  0x15   : > { %4257 = vmatmul.mubr.msk.f32.vlgmr.msra.gmra.mrb[0].mxu0 %vm5735_vm1, %v400_v5  ;;  %vm4935_vm1 = vmand %vm5744_vm13, %vm5739_vm11 }
  0x16   : > { %614 = vmatprep.mubr.f32.mxu0 %v4708_v0 }
  0x79   : > { %v532_v17 = vpop.permute.xlu1 %531 }
  0x7d   : > { %v514_v20 = vpop.permute.xlu1 %513 }
  0x86   : > { %v405_v6 = vpop.permute.xlu0 %404 }
  0x8a   : > { %v982_v18 = vpop.permute.xlu0 %981 }
  0x8e   : > { %v1081_v21 = vpop.permute.xlu0 %1080 }
  0xe8   : > { %v484_v7 = vpop.f32.mrb[0].mxu0 }
  0xe9   : > { %v485_v8 = vadd.f32 %v484_v7, %v405_v6  ;;  %v486_v9 = vpop.f32.mrb[1].mxu0 }
  0xea   : > { %v487_v10 = vadd.f32 %v486_v9, %v405_v6  ;;  %v5776_v6 = vmov 0 }
  0xeb   : > { %v489_v11 = vmax.f32 %v485_v8, 0.0 }
  0xec   : > { %v490_v12 = vmax.f32 %v487_v10, 0.0 }
  0xed   : > { %515 = vrot.lane.b32.xlu1 %v489_v11, %s4712_s25  ;;  %533 = vrot.lane.b32.xlu0 %v489_v11, %s4710_s17 }
  0xee   : > { %894 = vmatprep.subr.mxu1 %v490_v12 }
  0xef   : > { %895 = vmatpush1.msra.mxu1 %v489_v11 }
  0xf0   : > { %4274 = vmatmul.mubr.msk.f32.vlgmr.msra.gmra.mrb[0].mxu1 %vm5762_vm2, %v4273_v13  ;;  %v361_v13 = vld [vmem:[%s5722_s0] sm:$0xff] }
  0xf1   : > { %535 = vrot.lane.b32.xlu1 %v490_v12, %s4710_s17  ;;  %977 = vrot.lane.b32.xlu0 %v489_v11, %s4711_s22 }
  0xf2   : > { %1059 = vmatprep.mubr.f32.mxu1 %v4708_v0 }
  0xf5   : > { %979 = vrot.lane.b32.xlu1 %v490_v12, %s4711_s22  ;;  %1076 = vrot.lane.b32.xlu0 %v489_v11, %s4713_s26 }
  0xf9   : > { %705 = vrot.lane.b32.xlu1 %v489_v11, %s4714_s29  ;;  %1175 = vrot.lane.b32.xlu0 %v4708_v0, %s4715_s30 }
  0xfd   : > { %1078 = vrot.lane.b32.xlu1 %v490_v12, %s4713_s26  ;;  %517 = vrot.lane.b32.xlu0 %v490_v12, %s4712_s25 }
 0x101   : > { %703 = vrot.lane.b32.xlu1 %v4708_v0, %s4714_s29  ;;  %1171 = vrot.lane.b32.xlu0 %v489_v11, %s4715_s30 }
 0x105   : > { %1173 = vrot.lane.b32.xlu1 %v490_v12, %s4715_s30  ;;  %707 = vrot.lane.b32.xlu0 %v490_v12, %s4714_s29 }
 0x109   : > { %800 = vrot.lane.b32.xlu1 %v489_v11, %s4716_s11  ;;  %1272 = vrot.lane.b32.xlu0 %v4708_v0, %s4717_s12 }
 0x10d   : > { %1270 = vrot.lane.b32.xlu1 %v490_v12, %s4717_s12  ;;  %802 = vrot.lane.b32.xlu0 %v490_v12, %s4716_s11  ;;  %v378_v12 = vld [vmem:[%s5722_s0 + $0x88] sm:$0xff] }
 0x111   : > { %798 = vrot.lane.b32.xlu1 %v4708_v0, %s4716_s11  ;;  %1268 = vrot.lane.b32.xlu0 %v489_v11, %s4717_s12  ;;  %v377_v11 = vld [vmem:[%s5722_s0 + $0x80] sm:$0xff] }
 0x112   : > { %v5045_v22 = vpack.c.bf16 %v378_v12, %v377_v11  ;;  %v392_v11 = vld [vmem:[%s5722_s0 + $0xf8] sm:$0xff] }
 0x115   : > { %1443 = vperm.xlu0 %4694, %v1440_v14   ;;  %1362 = vperm.xlu1 %4695, %v1359_v15   ;;  %v362_v14 = vld [vmem:[%s5722_s0 + $0x8] sm:$0xff]  ;;  %v5778_v15 = vmov 0 }
 0x15f   : > { %v516_v24 = vpop.permute.xlu1 %515  ;;  %v534_v25 = vpop.permute.xlu0 %533 }
 0x160   : > { %v538_v33 = vsel %vm5734_vm3, %v532_v17, %v534_v25  ;;  %v380_v17 = vld [vmem:[%s5722_s0 + $0x98] sm:$0xff] }
 0x163   : > { %v536_v28 = vpop.permute.xlu1 %535  ;;  %v978_v29 = vpop.permute.xlu0 %977 }
 0x164   : > { %v539_v31 = vsel %vm5734_vm3, %v534_v25, %v536_v28  ;;  %vm4927_vm3 = vmand %vm5742_vm5, %vm5739_vm11  ;;  %v5049_v28 = vpack.c.bf16 %v362_v14, %v361_v13  ;;  %v375_v13 = vld [vmem:[%s5722_s0 + $0x70] sm:$0xff]  ;;  %v376_v14 = vld [vmem:[%s5722_s0 + $0x78] sm:$0xff] }
 0x165   : > { %4259 = vmatprep.subr.msk.mxu0 %vm5748_vm4, %v539_v31  ;;  %vm4973_vm11 = vmand %vm5742_vm5, %vm5749_vm8  ;;  %v363_v31 = vld [vmem:[%s5722_s0 + $0x10] sm:$0xff]  ;;  %vm5753_vm4 = vcmp.ge.s32.totalorder %v4871_v26, 2 }
 0x166   : > { %4260 = vmatpush1.msk.msra.mxu0 %vm5742_vm5, %v538_v33  ;;  %vm5003_vm5 = vmand %vm5743_vm10, %vm5750_vm7  ;;  %v381_v33 = vld [vmem:[%s5722_s0 + $0xa0] sm:$0xff] }
 0x167   : > { %v980_v34 = vpop.permute.xlu1 %979  ;;  %v1077_v35 = vpop.permute.xlu0 %1076  ;;  %4261 = vmatmul.mubr.msk.f32.vlgmr.msra.gmra.mrb[2].mxu0 %vm5762_vm2, %v4258_v32  ;;  %v5777_v6 = vsel %vm5003_vm5, 4294967295, %v5776_v6  ;;  %v364_v32 = vld [vmem:[%s5722_s0 + $0x18] sm:$0xff] }
 0x168   : > { %v984_v36 = vsel %vm5733_vm6, %v978_v29, %v980_v34  ;;  %v985_v37 = vsel %vm5733_vm6, %v980_v34, %v982_v18  ;;  %688 = vmatprep.mubr.f32.mxu0 %v4708_v0  ;;  %vm5737_vm6 = vcmask 138240   ;;  %v5055_v29 = vpack.c.bf16 %v380_v17, %v379_v16  ;;  %v382_v34 = vld [vmem:[%s5722_s0 + $0xa8] sm:$0xff] }
 0x169   : > { %4276 = vmatprep.subr.msk.mxu1 %vm5750_vm7, %v985_v37  ;;  %v520_v52 = vsel %vm5737_vm6, %v514_v20, %v516_v24  ;;  %v4269_v20 = vld [vmem:[%s5726_s4 + $0x18] sm:$0xff]  ;;  %v365_v37 = vld [vmem:[%s5722_s0 + $0x20] sm:$0xff]  ;;  %v5176_v16 = vpack.c.bf16 %v376_v14, %v375_v13 }
 0x16a   : > { %4277 = vmatpush1.msk.msra.mxu1 %vm5749_vm8, %v984_v36  ;;  %v5077_v36 = vpack.c.bf16 %v382_v34, %v381_v33  ;;  %v1557_v13 = vld [vmem:[%s5730_s8] sm:$0xff] }
 0x16b   : > { %v706_v39 = vpop.permute.xlu1 %705  ;;  %v1176_v40 = vpop.permute.xlu0 %1175  ;;  %4278 = vmatmul.mubr.msk.f32.vlgmr.msra.gmra.mrb[0].mxu1 %vm5762_vm2, %v4275_v38  ;;  %v366_v38 = vld [vmem:[%s5722_s0 + $0x28] sm:$0xff] }
 0x16c   : > { %1158 = vmatprep.mubr.f32.mxu1 %v4708_v0 }
 0x16f   : > { %v1079_v44 = vpop.permute.xlu1 %1078  ;;  %v518_v45 = vpop.permute.xlu0 %517 }
 0x170   : > { %v1083_v47 = vsel %vm5736_vm14, %v1077_v35, %v1079_v44  ;;  %v521_v48 = vsel %vm5737_vm6, %v516_v24, %v518_v45  ;;  %v1084_v49 = vsel %vm5736_vm14, %v1079_v44, %v1081_v21  ;;  %vm5740_vm14 = vcmask 916480   ;;  %v4287_v21 = vld [vmem:[%s5726_s4 + $0x40] sm:$0xff] }
 0x171   : > { %4262 = vmatprep.subr.msk.mxu0 %vm4909_vm12, %v521_v48  ;;  %4280 = vmatprep.subr.msk.mxu1 %vm4919_vm15, %v1084_v49  ;;  %vm5741_vm6 = vcmask 121856   ;;  %v5074_v35 = vpack.c.bf16 %v364_v32, %v363_v31  ;;  %v5092_v44 = vpack.c.bf16 %v366_v38, %v365_v37  ;;  %v368_v48 = vld [vmem:[%s5722_s0 + $0x38] sm:$0xff]  ;;  %v385_v49 = vld [vmem:[%s5722_s0 + $0xc0] sm:$0xff] }
 0x172   : > { %4263 = vmatpush1.msk.msra.mxu0 %vm4927_vm3, %v520_v52  ;;  %4281 = vmatpush1.msk.msra.mxu1 %vm4935_vm1, %v1083_v47  ;;  %v367_v47 = vld [vmem:[%s5722_s0 + $0x30] sm:$0xff] }
 0x173   : > { %v704_v53 = vpop.permute.xlu1 %703  ;;  %v1172_v54 = vpop.permute.xlu0 %1171  ;;  %4264 = vmatmul.mubr.msk.f32.vlgmr.msra.gmra.mrb[2].mxu0 %vm5762_vm2, %v526_v50  ;;  %4282 = vmatmul.mubr.msk.f32.vlgmr.msra.gmra.mrb[0].mxu1 %vm5762_vm2, %v4279_v51  ;;  %v386_v50 = vld [vmem:[%s5722_s0 + $0xc8] sm:$0xff]  ;;  %v5110_v51 = vpack.c.bf16 %v368_v48, %v367_v47 }
 0x174   : > { %785 = vmatprep.mubr.f32.mxu0 %v4708_v0  ;;  %1253 = vmatprep.mubr.f32.mxu1 %v4708_v0  ;;  %v710_v1 = vsel %vm5741_vm6, %v704_v53, %v706_v39  ;;  %v5113_v52 = vpack.c.bf16 %v386_v50, %v385_v49  ;;  %v369_v53 = vld [vmem:[%s5722_s0 + $0x40] sm:$0xff] }
 0x177   : > { %v1174_v56 = vpop.permute.xlu1 %1173  ;;  %v708_v57 = vpop.permute.xlu0 %707 }
 0x178   : > { %v1178_v59 = vsel %vm5740_vm14, %v1172_v54, %v1174_v56  ;;  %v711_v60 = vsel %vm5741_vm6, %v706_v39, %v708_v57  ;;  %v1179_v61 = vsel %vm5740_vm14, %v1174_v56, %v1176_v40  ;;  %vm5747_vm14 = vcmask 7168   ;;  %v383_v39 = vld [vmem:[%s5722_s0 + $0xb0] sm:$0xff]  ;;  %v384_v40 = vld [vmem:[%s5722_s0 + $0xb8] sm:$0xff]  ;;  %v370_v54 = vld [vmem:[%s5722_s0 + $0x48] sm:$0xff] }
 0x179   : > { %4266 = vmatprep.subr.msk.mxu0 %vm4965_vm0, %v711_v60  ;;  %4284 = vmatprep.subr.msk.mxu1 %vm5743_vm10, %v1179_v61  ;;  %vm5745_vm6 = vcmask 908288   ;;  %vm5029_vm10 = vmand %vm5744_vm13, %vm5749_vm8  ;;  %v5095_v45 = vpack.c.bf16 %v384_v40, %v383_v39  ;;  %v387_v56 = vld [vmem:[%s5722_s0 + $0xd0] sm:$0xff]  ;;  %v388_v57 = vld [vmem:[%s5722_s0 + $0xd8] sm:$0xff]  ;;  %vm5784_vm8 = vcmp.ge.s32.totalorder %v4877_v30, 1 }
 0x17a   : > { %4267 = vmatpush1.msk.msra.mxu0 %vm4973_vm11, %v710_v1  ;;  %4285 = vmatpush1.msk.msra.mxu1 %vm5744_vm13, %v1178_v59  ;;  %v5779_v15 = vsel %vm5029_vm10, 4294967295, %v5778_v15  ;;  %vm5780_vm13 = vcmp.ge.s32.totalorder %v4877_v30, 1  ;;  %v5128_v59 = vpack.c.bf16 %v370_v54, %v369_v53  ;;  %v5131_v60 = vpack.c.bf16 %v388_v57, %v387_v56  ;;  %v371_v61 = vld [vmem:[%s5722_s0 + $0x50] sm:$0xff]  ;;  %v389_v1 = vld [vmem:[%s5722_s0 + $0xe0] sm:$0xff]  ;;  %vm1558_vm7 = vmand %vm5753_vm4, %vm5784_vm8 }
 0x17b   : > { %v801_v2 = vpop.permute.xlu1 %800  ;;  %v1273_v5 = vpop.permute.xlu0 %1272  ;;  %4268 = vmatmul.mubr.msk.f32.vlgmr.msra.gmra.mrb[2].mxu0 %vm5762_vm2, %v4265_v62  ;;  %4286 = vmatmul.mubr.msk.f32.vlgmr.msra.gmra.mrb[0].mxu1 %vm5762_vm2, %v4283_v63  ;;  %v372_v62 = vld [vmem:[%s5722_s0 + $0x58] sm:$0xff]  ;;  %vm5785_vm8 = vcmp.ge.s32.totalorder %v4869_v23, 2 }
 0x17c   : > { %880 = vmatprep.mubr.f32.mxu0 %v4708_v0  ;;  %1350 = vmatprep.mubr.f32.mxu1 %v4708_v0  ;;  %v5140_v63 = vpack.c.bf16 %v372_v62, %v371_v61  ;;  %v4294_v61 = vld [vmem:[%s5730_s8 + $0x8] sm:$0xff] }
 0x17f   : > { %v1271_v7 = vpop.permute.xlu1 %1270  ;;  %v803_v8 = vpop.permute.xlu0 %802 }
 0x180   : > { %v806_v9 = vsel %vm5747_vm14, %v801_v2, %v803_v8  ;;  %v1276_v10 = vsel %vm5745_vm6, %v1271_v7, %v1273_v5  ;;  %v374_v8 = vld [vmem:[%s5722_s0 + $0x68] sm:$0xff] }
 0x181   : > { %4270 = vmatprep.subr.msk.mxu0 %vm5751_vm9, %v806_v9  ;;  %4288 = vmatprep.subr.msk.mxu1 %vm5003_vm5, %v1276_v10  ;;  %v391_v10 = vld [vmem:[%s5722_s0 + $0xf0] sm:$0xff] }
 0x182   : > { %v5168_v12 = vpack.c.bf16 %v392_v11, %v391_v10 }
 0x183   : > { %v799_v18 = vpop.permute.xlu1 %798  ;;  %v1269_v19 = vpop.permute.xlu0 %1268 }
 0x184   : > { %v805_v24 = vsel %vm5747_vm14, %v799_v18, %v801_v2  ;;  %v1275_v25 = vsel %vm5745_vm6, %v1269_v19, %v1271_v7  ;;  %v390_v2 = vld [vmem:[%s5722_s0 + $0xe8] sm:$0xff]  ;;  %v373_v7 = vld [vmem:[%s5722_s0 + $0x60] sm:$0xff] }
 0x185   : > { %4271 = vmatpush1.msk.msra.mxu0 %vm5780_vm13, %v805_v24  ;;  %4289 = vmatpush1.msk.msra.mxu1 %vm5029_vm10, %v1275_v25  ;;  %v5150_v5 = vpack.c.bf16 %v390_v2, %v389_v1  ;;  %v5158_v9 = vpack.c.bf16 %v374_v8, %v373_v7  ;;  %vm5781_vm13 = vcmask 1043456  }
 0x186   : > { %4272 = vmatmul.mubr.msk.f32.vlgmr.msra.gmra.mrb[2].mxu0 %vm5762_vm2, %v4269_v20  ;;  %4290 = vmatmul.mubr.msk.f32.vlgmr.msra.gmra.mrb[0].mxu1 %vm5762_vm2, %v4287_v21  ;;  %vm5782_vm6 = vmmov %vm5781_vm13 }
 0x187   : > { %4500 = vmatprep.subr.bf16.mxu0 %v5045_v22  ;;  %1646 = vmatprep.mubr.f32.mxu1 %v4708_v0 }
 0x188   : > { %4502 = vmatpush3.bf16.msra.mxu0 %v5049_v28 }
 0x189   : > { %4504 = vmatprep.subr.bf16.mxu0 %v5055_v29 }
 0x18c   : > { %4506 = vmatpush3.bf16.msra.mxu0 %v5074_v35 }
 0x18d   : > { %4508 = vmatprep.subr.bf16.mxu0 %v5077_v36 }
 0x190   : > { %4510 = vmatpush3.bf16.msra.mxu0 %v5092_v44 }
 0x191   : > { %4512 = vmatprep.subr.bf16.mxu0 %v5095_v45 }
 0x194   : > { %4514 = vmatpush3.bf16.msra.mxu0 %v5110_v51  ;;  %v1363_v17 = vpop.permute.xlu1 %1362  ;;  %v1444_v39 = vpop.permute.xlu0 %1443 }
 0x195   : > { %4516 = vmatprep.subr.bf16.mxu0 %v5113_v52 }
 0x198   : > { %4518 = vmatpush3.bf16.msra.mxu0 %v5128_v59 }
 0x199   : > { %4520 = vmatprep.subr.bf16.mxu0 %v5131_v60 }
 0x19c   : > { %4522 = vmatpush3.bf16.msra.mxu0 %v5140_v63 }
 0x19d   : > { %4524 = vmatprep.subr.bf16.mxu0 %v5150_v5 }
 0x1a0   : > { %4526 = vmatpush3.bf16.msra.mxu0 %v5158_v9 }
 0x1a1   : > { %4528 = vmatprep.subr.bf16.mxu0 %v5168_v12 }
 0x1a4   : > { %4530 = vmatpush3.bf16.msra.mxu0 %v5176_v16 }
 0x1a5   : > { %4291 = vmatprep.subr.msk.mxu0 %vm5781_vm13, %v4818_v4  ;;  %v1439_v4 = vld [vmem:[%s5728_s6] sm:$0xff]  ;;  %vm5783_vm13 = vcmask 31744  }
 0x259   : > { %v882_v18 = vpop.f32.mrb[2].mxu0  ;;  %v1352_v19 = vpop.f32.mrb[0].mxu1 }
 0x25a   : > { %v4595_v20 = vadd.f32 %v1352_v19, %v882_v18  ;;  %v884_v21 = vpop.f32.mrb[3].mxu0  ;;  %v1354_v24 = vpop.f32.mrb[1].mxu1 }
 0x25b   : > { %v4596_v25 = vadd.f32 %v1354_v24, %v884_v21  ;;  %v4301_v24 = vld [vmem:[%s5730_s8 + $0x10] sm:$0xff] }
 0x25c   : > { %v1365_v31 = vadd.f32 %v4595_v20, %v1363_v17 }
 0x25d   : > { %v1366_v32 = vadd.f32 %v4596_v25, %v1363_v17 }
 0x25e   : > { %v1367_v34 = vmax.f32 %v1365_v31, 0.0 }
 0x25f   : > { %v1368_v33 = vmax.f32 %v1366_v32, 0.0 }
 0x261   : > { %1433 = vmatprep.mubr.f32.mxu0 %v1368_v33 }
 0x262   : > { %1434 = vmatmul.mubr.f32.vlgmr.msra.gmra.mrb[4].mxu0 %v1367_v34 }
 0x263   : > { %4292 = vmatpush1.msk.msra.mxu0 %vm5782_vm6, %v4812_v3  ;;  %1513 = vmatprep.mubr.f32.mxu0 %v4708_v0  ;;  %vm5746_vm6 = vcmask 523264  }
 0x264   : > { %4532 = vmatprep.subr.bf16.mxu0 %v5045_v22 }
 0x266   : > { %4293 = vmatmul.mubr.msk.f32.vlgmr.msra.gmra.mrb[6].mxu0 %vm5783_vm13, %v1439_v4  ;;  %vm5752_vm13 = vcmp.ge.s32.totalorder %v4869_v23, 2 }
 0x267   : > { %4534 = vmatpush3.bf16.msra.mxu0 %v5049_v28  ;;  %vm1559_vm14 = vmand %vm5752_vm13, %vm5751_vm9  ;;  %vm5757_vm9 = vcmp.ge.s32.totalorder %v4874_v27, 2  ;;  %vm5756_vm13 = vcmp.ge.s32.totalorder %v4877_v30, 2 }
 0x268   : > { %4536 = vmatprep.subr.bf16.mxu0 %v5055_v29  ;;  %vm1536_vm4 = vmand %vm5785_vm8, %vm5757_vm9  ;;  %vm5761_vm9 = vcmp.lt.s32.totalorder %v4874_v27, 14 }
 0x26b   : > { %4538 = vmatpush3.bf16.msra.mxu0 %v5074_v35 }
 0x26c   : > { %4540 = vmatprep.subr.bf16.mxu0 %v5077_v36 }
 0x26f   : > { %4542 = vmatpush3.bf16.msra.mxu0 %v5092_v44 }
 0x270   : > { %4544 = vmatprep.subr.bf16.mxu0 %v5095_v45 }
 0x273   : > { %4546 = vmatpush3.bf16.msra.mxu0 %v5110_v51 }
 0x274   : > { %4548 = vmatprep.subr.bf16.mxu0 %v5113_v52 }
 0x277   : > { %4550 = vmatpush3.bf16.msra.mxu0 %v5128_v59 }
 0x278   : > { %4552 = vmatprep.subr.bf16.mxu0 %v5131_v60 }
 0x27b   : > { %4554 = vmatpush3.bf16.msra.mxu0 %v5140_v63 }
 0x27c   : > { %4556 = vmatprep.subr.bf16.mxu0 %v5150_v5 }
 0x27f   : > { %4558 = vmatpush3.bf16.msra.mxu0 %v5158_v9 }
 0x280   : > { %4560 = vmatprep.subr.bf16.mxu0 %v5168_v12 }
 0x283   : > { %4562 = vmatpush3.bf16.msra.mxu0 %v5176_v16 }
 0x284   : > { %4564 = vmatprep.subr.bf16.mxu0 %v5045_v22 }
 0x335   : > { %v4426_v3 = vpop.f32.mrb[4].mxu0 }
 0x336   : > { %v4427_v37 = vpop.f32.mrb[5].mxu0 }
 0x337   : > { %v4428_v38 = vadd.f32 %v4427_v37, %v4426_v3  ;;  %v3885_v3 = vld [vmem:[%s5731_s9] sm:$0xff] }
 0x339   : > { %4188 = vst.msk [vmem:[%s5210_s28] sm:$0xff] %vm5746_vm6, %v4428_v38  ;;  %v1515_v40 = vpop.f32.mrb[6].mxu0  ;;  %vm1570_vm6 = vcmask 269312   ;;  %v4305_v38 = vld [vmem:[%s5730_s8 + $0x18] sm:$0xff] }
 0x33a   : > { %v1516_v47 = vadd.f32 %v1515_v40, %v1444_v39  ;;  %v1517_v48 = vpop.f32.mrb[7].mxu0 }
 0x33b   : > { %v1518_v49 = vadd.f32 %v1517_v48, %v1444_v39 }
 0x33c   : > { %v5214_v50 = vmax.f32 %v1516_v47, 0.0 }
 0x33d   : > { %v5216_v22 = vmax.f32 %v1518_v49, 0.0 }
 0x33e   : > { %1566 = vrot.lane.b32.xlu1 %v5214_v50, %s4718_s14 }
 0x33f   : > { %1568 = vrot.lane.b32.xlu0 %v5216_v22, %s4718_s14 }
 0x342   : > { %1564 = vrot.lane.b32.xlu1 %v4708_v0, %s4718_s14  ;;  %s4728_s14 = smov 110  }
 0x343   : > { %1546 = vrot.lane.b32.xlu0 %v5214_v50, %s4719_s15 }
 0x346   : > { %1548 = vrot.lane.b32.xlu1 %v5216_v22, %s4719_s15 }
 0x347   : > { %1544 = vrot.lane.b32.xlu0 %v4708_v0, %s4719_s15  ;;  %s4729_s15 = smov 98  }
 0x34a   : > { %1733 = vrot.lane.b32.xlu1 %v5214_v50, %s4720_s16 }
 0x34b   : > { %1735 = vrot.lane.b32.xlu0 %v5216_v22, %s4720_s16 }
 0x34e   : > { %1731 = vrot.lane.b32.xlu1 %v4708_v0, %s4720_s16 }
 0x34f   : > { %1830 = vrot.lane.b32.xlu0 %v5214_v50, %s4721_s18 }
 0x352   : > { %1832 = vrot.lane.b32.xlu1 %v5216_v22, %s4721_s18 }
 0x353   : > { %1828 = vrot.lane.b32.xlu0 %v4708_v0, %s4721_s18 }
 0x356   : > { %1929 = vrot.lane.b32.xlu1 %v5214_v50, %s4722_s19 }
 0x357   : > { %1931 = vrot.lane.b32.xlu0 %v5216_v22, %s4722_s19 }
 0x35a   : > { %1927 = vrot.lane.b32.xlu1 %v4708_v0, %s4722_s19  ;;  %s4730_s19 = smov 97  }
 0x35b   : > { %2026 = vrot.lane.b32.xlu0 %v5214_v50, %s4723_s20 }
 0x35e   : > { %2028 = vrot.lane.b32.xlu1 %v5216_v22, %s4723_s20 }
 0x35f   : > { %2024 = vrot.lane.b32.xlu0 %v4708_v0, %s4723_s20  ;;  %s4731_s20 = smov 96  }
 0x362   : > { %2117 = vrot.lane.b32.xlu1 %v5214_v50, %s4712_s25 }
 0x363   : > { %2119 = vrot.lane.b32.xlu0 %v5216_v22, %s4712_s25 }
 0x366   : > { %2115 = vrot.lane.b32.xlu1 %v4708_v0, %s4712_s25 }
 0x367   : > { %2207 = vrot.lane.b32.xlu0 %v5214_v50, %s4710_s17 }
 0x36a   : > { %2209 = vrot.lane.b32.xlu1 %v5216_v22, %s4710_s17 }
 0x36b   : > { %2205 = vrot.lane.b32.xlu0 %v4708_v0, %s4710_s17 }
 0x36e   : > { %2297 = vrot.lane.b32.xlu1 %v5214_v50, %s4714_s29 }
 0x36f   : > { %2299 = vrot.lane.b32.xlu0 %v5216_v22, %s4714_s29 }
 0x372   : > { %2295 = vrot.lane.b32.xlu1 %v4708_v0, %s4714_s29 }
 0x373   : > { %2393 = vrot.lane.b32.xlu0 %v5214_v50, %s4724_s21 }
 0x376   : > { %2395 = vrot.lane.b32.xlu1 %v5216_v22, %s4724_s21 }
 0x377   : > { %2391 = vrot.lane.b32.xlu0 %v4708_v0, %s4724_s21 }
 0x37a   : > { %2488 = vrot.lane.b32.xlu1 %v5214_v50, %s4725_s23 }
 0x37b   : > { %2490 = vrot.lane.b32.xlu0 %v5216_v22, %s4725_s23 }
 0x37e   : > { %2486 = vrot.lane.b32.xlu1 %v4708_v0, %s4725_s23 }
 0x37f   : > { %2579 = vrot.lane.b32.xlu0 %v5214_v50, %s4716_s11 }
 0x382   : > { %2581 = vrot.lane.b32.xlu1 %v5216_v22, %s4716_s11 }
 0x383   : > { %2577 = vrot.lane.b32.xlu0 %v4708_v0, %s4716_s11 }
 0x386   : > { %2753 = vrot.lane.b32.xlu1 %v5216_v22, %s4711_s22 }
 0x387   : > { %2755 = vrot.lane.b32.xlu0 %v4708_v0, %s4711_s22 }
 0x38a   : > { %2751 = vrot.lane.b32.xlu1 %v5214_v50, %s4711_s22 }
 0x38b   : > { %2847 = vrot.lane.b32.xlu0 %v5216_v22, %s4726_s24 }
 0x38e   : > { %2849 = vrot.lane.b32.xlu1 %v4708_v0, %s4726_s24 }
 0x38f   : > { %2845 = vrot.lane.b32.xlu0 %v5214_v50, %s4726_s24  ;;  %s4732_s24 = smov 95  }
 0x392   : > { %2944 = vrot.lane.b32.xlu1 %v5216_v22, %s4727_s27 }
 0x393   : > { %2946 = vrot.lane.b32.xlu0 %v4708_v0, %s4727_s27 }
 0x396   : > { %2942 = vrot.lane.b32.xlu1 %v5214_v50, %s4727_s27 }
 0x397   : > { %3035 = vrot.lane.b32.xlu0 %v5216_v22, %s4713_s26 }
 0x39a   : > { %3037 = vrot.lane.b32.xlu1 %v4708_v0, %s4713_s26 }
 0x39b   : > { %3033 = vrot.lane.b32.xlu0 %v5214_v50, %s4713_s26 }
 0x39e   : > { %3125 = vrot.lane.b32.xlu1 %v5216_v22, %s4715_s30 }
 0x39f   : > { %3127 = vrot.lane.b32.xlu0 %v4708_v0, %s4715_s30 }
 0x3a2   : > { %3123 = vrot.lane.b32.xlu1 %v5214_v50, %s4715_s30 }
 0x3a3   : > { %3215 = vrot.lane.b32.xlu0 %v5216_v22, %s4717_s12 }
 0x3a6   : > { %3217 = vrot.lane.b32.xlu1 %v4708_v0, %s4717_s12 }
 0x3a7   : > { %3213 = vrot.lane.b32.xlu0 %v5214_v50, %s4717_s12 }
 0x3aa   : > { %3311 = vrot.lane.b32.xlu1 %v5216_v22, %s4728_s14 }
 0x3ab   : > { %3313 = vrot.lane.b32.xlu0 %v4708_v0, %s4728_s14 }
 0x3ae   : > { %3309 = vrot.lane.b32.xlu1 %v5214_v50, %s4728_s14 }
 0x3af   : > { %3410 = vrot.lane.b32.xlu0 %v5216_v22, %s4729_s15 }
 0x3b0   : > { %v1567_v53 = vpop.permute.xlu1 %1566 }
 0x3b1   : > { %v1569_v54 = vpop.permute.xlu0 %1568 }
 0x3b2   : > { %v1572_v56 = vsel %vm1570_vm6, %v1567_v53, %v1569_v54  ;;  %3412 = vrot.lane.b32.xlu1 %v4708_v0, %s4729_s15  ;;  %v4309_v54 = vld [vmem:[%s5730_s8 + $0x20] sm:$0xff] }
 0x3b3   : > { %3408 = vrot.lane.b32.xlu0 %v5214_v50, %s4729_s15  ;;  %4295 = vmatprep.subr.msk.mxu1 %vm1559_vm14, %v1572_v56  ;;  %vm1550_vm14 = vcmask 277504   ;;  %s4733_s15 = smov 94  }
 0x3b4   : > { %v1565_v57 = vpop.permute.xlu1 %1564 }
 0x3b5   : > { %v1571_v62 = vsel %vm1570_vm6, %v1565_v57, %v1567_v53  ;;  %v1547_v1 = vpop.permute.xlu0 %1546  ;;  %vm5786_vm6 = vcmp.ge.s32.totalorder %v4871_v26, 2 }
 0x3b6   : > { %3507 = vrot.lane.b32.xlu1 %v5216_v22, %s4730_s19  ;;  %4296 = vmatpush1.msk.msra.mxu1 %vm1558_vm7, %v1571_v62  ;;  %vm1535_vm10 = vmand %vm5786_vm6, %vm5756_vm13  ;;  %vm1737_vm7 = vcmask 261120  }
 0x3b7   : > { %3509 = vrot.lane.b32.xlu0 %v4708_v0, %s4730_s19  ;;  %4297 = vmatmul.mubr.msk.f32.vlgmr.msra.gmra.mrb[2].mxu1 %vm5762_vm2, %v4294_v61 }
 0x3b8   : > { %v1549_v2 = vpop.permute.xlu1 %1548  ;;  %1720 = vmatprep.mubr.f32.mxu1 %v4708_v0 }
 0x3b9   : > { %v1552_v7 = vsel %vm1550_vm14, %v1547_v1, %v1549_v2  ;;  %v1545_v8 = vpop.permute.xlu0 %1544 }
 0x3ba   : > { %v1551_v10 = vsel %vm1550_vm14, %v1545_v8, %v1547_v1  ;;  %3505 = vrot.lane.b32.xlu1 %v5214_v50, %s4730_s19  ;;  %4298 = vmatprep.subr.msk.mxu1 %vm1536_vm4, %v1552_v7  ;;  %vm5787_vm4 = vmmov %vm5785_vm8  ;;  %vm1834_vm14 = vcmask 252928   ;;  %vm5789_vm8 = vcmp.lt.s32.totalorder %v4874_v27, 15  ;;  %v4313_v7 = vld [vmem:[%s5730_s8 + $0x28] sm:$0xff] }
 0x3bb   : > { %3602 = vrot.lane.b32.xlu0 %v5216_v22, %s4731_s20  ;;  %4299 = vmatpush1.msk.msra.mxu1 %vm1535_vm10, %v1551_v10  ;;  %vm5788_vm10 = vmmov %vm5786_vm6 }
 0x3bc   : > { %v1734_v11 = vpop.permute.xlu1 %1733  ;;  %vm5790_vm6 = vmmov %vm5787_vm4 }
 0x3bd   : > { %v1736_v14 = vpop.permute.xlu0 %1735  ;;  %vm1823_vm13 = vmand %vm5790_vm6, %vm5789_vm8  ;;  %vm1933_vm8 = vcmask 244736  }
 0x3be   : > { %v1739_v17 = vsel %vm1737_vm7, %v1734_v11, %v1736_v14  ;;  %3604 = vrot.lane.b32.xlu1 %v4708_v0, %s4731_s20  ;;  %vm1922_vm5 = vmand %vm5790_vm6, %vm5761_vm9  ;;  %vm5798_vm9 = vcmask 138240  }
 0x3bf   : > { %3600 = vrot.lane.b32.xlu0 %v5214_v50, %s4731_s20  ;;  %4300 = vmatmul.mubr.msk.f32.vlgmr.msra.gmra.mrb[2].mxu1 %vm5762_vm2, %v1557_v13 }
 0x3c0   : > { %4302 = vmatprep.subr.msk.mxu1 %vm5787_vm4, %v1739_v17  ;;  %v1732_v18 = vpop.permute.xlu1 %1731  ;;  %1813 = vmatprep.mubr.f32.mxu1 %v4708_v0  ;;  %vm5792_vm4 = vmmov %vm5788_vm10 }
 0x3c1   : > { %v1738_v19 = vsel %vm1737_vm7, %v1732_v18, %v1734_v11  ;;  %v1831_v20 = vpop.permute.xlu0 %1830  ;;  %vm5791_vm7 = vcmp.lt.s32.totalorder %v4877_v30, 15  ;;  %v4317_v18 = vld [vmem:[%s5730_s8 + $0x30] sm:$0xff] }
 0x3c2   : > { %3699 = vrot.lane.b32.xlu1 %v5216_v22, %s4732_s24  ;;  %4303 = vmatpush1.msk.msra.mxu1 %vm5788_vm10, %v1738_v19  ;;  %vm1822_vm10 = vmand %vm5792_vm4, %vm5791_vm7 }
 0x3c3   : > { %3701 = vrot.lane.b32.xlu0 %v4708_v0, %s4732_s24 }
 0x3c4   : > { %v1833_v21 = vpop.permute.xlu1 %1832 }
 0x3c5   : > { %v1836_v25 = vsel %vm1834_vm14, %v1831_v20, %v1833_v21  ;;  %v1829_v31 = vpop.permute.xlu0 %1828 }
 0x3c6   : > { %v1835_v32 = vsel %vm1834_vm14, %v1829_v31, %v1831_v20  ;;  %3697 = vrot.lane.b32.xlu1 %v5214_v50, %s4732_s24  ;;  %4306 = vmatprep.subr.msk.mxu1 %vm1823_vm13, %v1836_v25  ;;  %vm5760_vm13 = vcmp.lt.s32.totalorder %v4877_v30, 14  ;;  %vm5793_vm14 = vmmov %vm5792_vm4  ;;  %vm2030_vm4 = vcmask 146432   ;;  %v4321_v31 = vld [vmem:[%s5730_s8 + $0x38] sm:$0xff] }
 0x3c7   : > { %3796 = vrot.lane.b32.xlu0 %v5216_v22, %s4733_s15  ;;  %4304 = vmatmul.mubr.msk.f32.vlgmr.msra.gmra.mrb[2].mxu1 %vm5762_vm2, %v4301_v24  ;;  %vm1921_vm7 = vmand %vm5793_vm14, %vm5760_vm13  ;;  %vm5797_vm14 = vcmp.ge.s32.totalorder %v4871_v26, 1 }
 0x3c8   : > { %4307 = vmatpush1.msk.msra.mxu1 %vm1822_vm10, %v1835_v32  ;;  %v1930_v33 = vpop.permute.xlu1 %1929  ;;  %1910 = vmatprep.mubr.f32.mxu1 %v4708_v0  ;;  %vm5795_vm10 = vcmp.ge.s32.totalorder %v4869_v23, 1 }
 0x3c9   : > { %v1932_v34 = vpop.permute.xlu0 %1931 }
 0x3ca   : > { %v1935_v4 = vsel %vm1933_vm8, %v1930_v33, %v1932_v34  ;;  %3798 = vrot.lane.b32.xlu1 %v4708_v0, %s4733_s15 }
 0x3cb   : > { %3794 = vrot.lane.b32.xlu0 %v5214_v50, %s4733_s15  ;;  %4310 = vmatprep.subr.msk.mxu1 %vm1922_vm5, %v1935_v4  ;;  %vm5794_vm5 = vcmp.ge.s32.totalorder %v4874_v27, 2 }
 0x3cc   : > { %v1928_v37 = vpop.permute.xlu1 %1927  ;;  %vm2019_vm6 = vmand %vm5795_vm10, %vm5794_vm5  ;;  %vm5803_vm5 = vcmask 121856  }
 0x3cd   : > { %v1934_v39 = vsel %vm1933_vm8, %v1928_v37, %v1930_v33  ;;  %v2027_v40 = vpop.permute.xlu0 %2026  ;;  %vm5796_vm8 = vcmp.ge.s32.totalorder %v4877_v30, 2  ;;  %v4325_v37 = vld [vmem:[%s5730_s8 + $0x40] sm:$0xff] }
 0x3ce   : > { %3888 = vperm.xlu1 %4695, %v3885_v3   ;;  %vm2018_vm13 = vmand %vm5797_vm14, %vm5796_vm8  ;;  %vm5805_vm8 = vcmp.lt.s32.totalorder %v4874_v27, 14 }
 0x3cf   : > { %4308 = vmatmul.mubr.msk.f32.vlgmr.msra.gmra.mrb[2].mxu1 %vm5762_vm2, %v4305_v38 }
 0x3d0   : > { %4311 = vmatpush1.msk.msra.mxu1 %vm1921_vm7, %v1934_v39  ;;  %v2029_v47 = vpop.permute.xlu1 %2028  ;;  %2009 = vmatprep.mubr.f32.mxu1 %v4708_v0  ;;  %vm5799_vm7 = vmmov %vm5798_vm9 }
 0x3d1   : > { %v2032_v48 = vsel %vm2030_vm4, %v2027_v40, %v2029_v47  ;;  %v2025_v49 = vpop.permute.xlu0 %2024 }
 0x3d2   : > { %4314 = vmatprep.subr.msk.mxu1 %vm2019_vm6, %v2032_v48  ;;  %v2031_v61 = vsel %vm2030_vm4, %v2025_v49, %v2027_v40  ;;  %vm2397_vm6 = vcmask 113664   ;;  %v3968_v40 = vld [vmem:[#allocation4] sm:$0xff] }
 0x3d3   : > { %v3972_v48 = vcombine.high %v3968_v40, %v3968_v40  ;;  %3973 = vrot.lane.b32.xlu0 %v3968_v40, %s4712_s25 }
 0x3d4   : > { %v2118_v53 = vpop.permute.xlu1 %2117 }
 0x3d5   : > { %v2120_v56 = vpop.permute.xlu0 %2119  ;;  %3975 = vrot.lane.b32.xlu1 %v3972_v48, %s4712_s25 }
 0x3d6   : > { %v2122_v57 = vsel %vm5798_vm9, %v2118_v53, %v2120_v56  ;;  %vm5800_vm9 = vcmask 130048  }
 0x3d7   : > { %4312 = vmatmul.mubr.msk.f32.vlgmr.msra.gmra.mrb[2].mxu1 %vm5762_vm2, %v4309_v54  ;;  %vm5802_vm4 = vmmov %vm5800_vm9  ;;  %v4329_v54 = vld [vmem:[%s5730_s8 + $0x48] sm:$0xff] }
 0x3d8   : > { %4315 = vmatpush1.msk.msra.mxu1 %vm2018_vm13, %v2031_v61  ;;  %v2116_v62 = vpop.permute.xlu1 %2115  ;;  %2106 = vmatprep.mubr.f32.mxu1 %v4708_v0  ;;  %vm5801_vm13 = vmmov %vm5795_vm10 }
 0x3d9   : > { %4318 = vmatprep.subr.msk.mxu1 %vm4909_vm12, %v2122_v57  ;;  %v2208_v1 = vpop.permute.xlu0 %2207  ;;  %v2121_v10 = vsel %vm5799_vm7, %v2116_v62, %v2118_v53  ;;  %vm5804_vm10 = vmmov %vm5797_vm14  ;;  %v3969_v53 = vld [vmem:[#allocation4 + $0x8] sm:$0xf]  ;;  %3990 = vrot.lane.b32.xlu1 %v3968_v40, %s4710_s17 }
 0x3da   : > { %vm5806_vm14 = vmmov %vm5801_vm13  ;;  %3977 = vrot.lane.b32.xlu0 %v3969_v53, %s4712_s25 }
 0x3db   : > { %vm2386_vm7 = vmand %vm5806_vm14, %vm5805_vm8  ;;  %vm5810_vm8 = vcmp.ge.s32.totalorder %v4874_v27, 2  ;;  %vm5812_vm14 = vcmp.ge.s32.totalorder %v4877_v30, 2 }
 0x3dc   : > { %v2210_v2 = vpop.permute.xlu1 %2209 }
 0x3dd   : > { %v2206_v8 = vpop.permute.xlu0 %2205  ;;  %v2212_v11 = vsel %vm5800_vm9, %v2208_v1, %v2210_v2  ;;  %vm5807_vm9 = vmmov %vm5803_vm5  ;;  %3994 = vrot.lane.b32.xlu1 %v3969_v53, %s4710_s17  ;;  %v4333_v2 = vld [vmem:[%s5730_s8 + $0x50] sm:$0xff] }
 0x3de   : > { %v2211_v20 = vsel %vm5802_vm4, %v2206_v8, %v2208_v1  ;;  %vm5808_vm4 = vcmp.lt.s32.totalorder %v4877_v30, 14  ;;  %3992 = vrot.lane.b32.xlu0 %v3972_v48, %s4710_s17 }
 0x3df   : > { %4316 = vmatmul.mubr.msk.f32.vlgmr.msra.gmra.mrb[2].mxu1 %vm5762_vm2, %v4313_v7 }
 0x3e0   : > { %4319 = vmatpush1.msk.msra.mxu1 %vm4927_vm3, %v2121_v10  ;;  %v2298_v13 = vpop.permute.xlu1 %2297  ;;  %2196 = vmatprep.mubr.f32.mxu1 %v4708_v0 }
 0x3e1   : > { %4322 = vmatprep.subr.msk.mxu1 %vm5801_vm13, %v2212_v11  ;;  %v2300_v14 = vpop.permute.xlu0 %2299  ;;  %vm2492_vm13 = vcmask 15360   ;;  %4009 = vrot.lane.b32.xlu1 %v3972_v48, %s4714_s29 }
 0x3e2   : > { %v2302_v21 = vsel %vm5803_vm5, %v2298_v13, %v2300_v14  ;;  %vm5809_vm5 = vmmov %vm5804_vm10  ;;  %4007 = vrot.lane.b32.xlu0 %v3968_v40, %s4714_s29  ;;  %v4337_v14 = vld [vmem:[%s5730_s8 + $0x58] sm:$0xff] }
 0x3e4   : > { %v2296_v17 = vpop.permute.xlu1 %2295 }
 0x3e5   : > { %v2394_v19 = vpop.permute.xlu0 %2393  ;;  %v2301_v33 = vsel %vm5807_vm9, %v2296_v17, %v2298_v13  ;;  %4024 = vrot.lane.b32.xlu1 %v3968_v40, %s4716_s11  ;;  %v4041_v13 = vld [vmem:[#allocation4 + $0x4] sm:$0xff] }
 0x3e6   : > { %4011 = vrot.lane.b32.xlu0 %v3969_v53, %s4714_s29  ;;  %v4045_v17 = vcombine.high %v4041_v13, %v4041_v13 }
 0x3e7   : > { %4320 = vmatmul.mubr.msk.f32.vlgmr.msra.gmra.mrb[2].mxu1 %vm5762_vm2, %v4317_v18 }
 0x3e8   : > { %4323 = vmatpush1.msk.msra.mxu1 %vm5804_vm10, %v2211_v20  ;;  %v2396_v24 = vpop.permute.xlu1 %2395  ;;  %2286 = vmatprep.mubr.f32.mxu1 %v4708_v0  ;;  %vm2385_vm10 = vmand %vm5809_vm5, %vm5808_vm4  ;;  %vm5816_vm4 = vcmask 1039360   ;;  %vm5817_vm5 = vcmp.lt.s32.totalorder %v4874_v27, 15  ;;  %v4042_v20 = vld [vmem:[#allocation4 + $0xc] sm:$0xf] }
 0x3e9   : > { %4326 = vmatprep.subr.msk.mxu1 %vm4965_vm0, %v2302_v21  ;;  %v2392_v25 = vpop.permute.xlu0 %2391  ;;  %v2399_v34 = vsel %vm2397_vm6, %v2394_v19, %v2396_v24  ;;  %4028 = vrot.lane.b32.xlu1 %v3969_v53, %s4716_s11  ;;  %v4341_v21 = vld [vmem:[%s5730_s8 + $0x60] sm:$0xff]  ;;  %v4351_v53 = vld [vmem:[%s5730_s8 + $0x78] sm:$0xff] }
 0x3ea   : > { %v2398_v38 = vsel %vm2397_vm6, %v2392_v25, %v2394_v19  ;;  %vm5811_vm6 = vcmask 7168   ;;  %4026 = vrot.lane.b32.xlu0 %v3972_v48, %s4716_s11 }
 0x3eb   : > { %vm5814_vm9 = vmmov %vm5811_vm6 }
 0x3ec   : > { %v2489_v32 = vpop.permute.xlu1 %2488 }
 0x3ed   : > { %v2491_v4 = vpop.permute.xlu0 %2490  ;;  %4048 = vrot.lane.b32.xlu1 %v4045_v17, %s4711_s22 }
 0x3ee   : > { %v2494_v47 = vsel %vm2492_vm13, %v2489_v32, %v2491_v4  ;;  %4046 = vrot.lane.b32.xlu0 %v4041_v13, %s4711_s22 }
 0x3ef   : > { %4324 = vmatmul.mubr.msk.f32.vlgmr.msra.gmra.mrb[2].mxu1 %vm5762_vm2, %v4321_v31 }
 0x3f0   : > { %4327 = vmatpush1.msk.msra.mxu1 %vm4973_vm11, %v2301_v33  ;;  %2376 = vmatprep.mubr.f32.mxu1 %v4708_v0  ;;  %v2487_v3 = vpop.permute.xlu1 %2486  ;;  %v4343_v33 = vld [vmem:[%s5730_s8 + $0x68] sm:$0xff] }
 0x3f1   : > { %4330 = vmatprep.subr.msk.mxu1 %vm2386_vm7, %v2399_v34  ;;  %v2580_v39 = vpop.permute.xlu0 %2579  ;;  %v2493_v57 = vsel %vm2492_vm13, %v2487_v3, %v2489_v32  ;;  %vm5813_vm7 = vcmp.ge.s32.totalorder %v4874_v27, 1  ;;  %vm5815_vm13 = vcmp.ge.s32.totalorder %v4877_v30, 1  ;;  %4063 = vrot.lane.b32.xlu1 %v4041_v13, %s4713_s26 }
 0x3f2   : > { %4050 = vrot.lane.b32.xlu0 %v4042_v20, %s4711_s22 }
 0x3f4   : > { %v2582_v49 = vpop.permute.xlu1 %2581 }
 0x3f5   : > { %v2578_v56 = vpop.permute.xlu0 %2577  ;;  %v2584_v62 = vsel %vm5811_vm6, %v2580_v39, %v2582_v49  ;;  %vm5819_vm6 = vcmp.lt.s32.totalorder %v4877_v30, 15  ;;  %4067 = vrot.lane.b32.xlu1 %v4042_v20, %s4713_s26 }
 0x3f6   : > { %v2583_v8 = vsel %vm5814_vm9, %v2578_v56, %v2580_v39  ;;  %4065 = vrot.lane.b32.xlu0 %v4045_v17, %s4713_s26  ;;  %vm5821_vm9 = vcmp.ge.s32.totalorder %v4874_v27, 2  ;;  %v4347_v39 = vld [vmem:[%s5730_s8 + $0x70] sm:$0xff] }
 0x3f7   : > { %4328 = vmatmul.mubr.msk.f32.vlgmr.msra.gmra.mrb[2].mxu1 %vm5762_vm2, %v4325_v37 }
 0x3f8   : > { %4331 = vmatpush1.msk.msra.mxu1 %vm2385_vm10, %v2398_v38  ;;  %2473 = vmatprep.mubr.f32.mxu1 %v4708_v0  ;;  %v2754_v61 = vpop.permute.xlu1 %2753  ;;  %vm2851_vm10 = vcmask 1031168  }
 0x3f9   : > { %4334 = vmatprep.subr.msk.mxu1 %vm5810_vm8, %v2494_v47  ;;  %v2756_v1 = vpop.permute.xlu0 %2755  ;;  %vm5818_vm8 = vmmov %vm5816_vm4  ;;  %4082 = vrot.lane.b32.xlu1 %v4045_v17, %s4715_s30 }
 0x3fa   : > { %4080 = vrot.lane.b32.xlu0 %v4041_v13, %s4715_s30 }
 0x3fc   : > { %v2752_v7 = vpop.permute.xlu1 %2751 }
 0x3fd   : > { %v2848_v10 = vpop.permute.xlu0 %2847  ;;  %4097 = vrot.lane.b32.xlu1 %v4041_v13, %s4717_s12  ;;  %v4359_v13 = vld [vmem:[%s5730_s8 + $0x88] sm:$0xff] }
 0x3fe   : > { %4084 = vrot.lane.b32.xlu0 %v4042_v20, %s4715_s30 }
 0x3ff   : > { %4332 = vmatmul.mubr.msk.f32.vlgmr.msra.gmra.mrb[2].mxu1 %vm5762_vm2, %v4329_v54 }
 0x400   : > { %4335 = vmatpush1.msk.msra.mxu1 %vm5812_vm14, %v2493_v57  ;;  %2568 = vmatprep.mubr.f32.mxu1 %v4708_v0  ;;  %v2850_v11 = vpop.permute.xlu1 %2849  ;;  %vm5820_vm14 = vcmp.lt.s32.totalorder %v4874_v27, 14 }
 0x401   : > { %4338 = vmatprep.subr.msk.mxu1 %vm5813_vm7, %v2584_v62  ;;  %v2846_v18 = vpop.permute.xlu0 %2845  ;;  %v2853_v31 = vsel %vm2851_vm10, %v2848_v10, %v2850_v11  ;;  %vm2948_vm7 = vcmask 932864   ;;  %4101 = vrot.lane.b32.xlu1 %v4042_v20, %s4717_s12 }
 0x402   : > { %v2852_v4 = vsel %vm2851_vm10, %v2846_v18, %v2848_v10  ;;  %vm5824_vm10 = vcmp.ge.s32.totalorder %v4877_v30, 2  ;;  %4099 = vrot.lane.b32.xlu0 %v4045_v17, %s4717_s12 }
 0x404   : > { %v2945_v19 = vpop.permute.xlu1 %2944 }
 0x405   : > { %v2947_v24 = vpop.permute.xlu0 %2946 }
 0x406   : > { %v2950_v3 = vsel %vm2948_vm7, %v2945_v19, %v2947_v24 }
 0x407   : > { %4336 = vmatmul.mubr.msk.f32.vlgmr.msra.gmra.mrb[2].mxu1 %vm5762_vm2, %v4333_v2 }
 0x408   : > { %4339 = vmatpush1.msk.msra.mxu1 %vm5815_vm13, %v2583_v8  ;;  %2658 = vmatprep.mubr.f32.mxu1 %v4708_v0  ;;  %v2943_v25 = vpop.permute.xlu1 %2942  ;;  %vm5822_vm13 = vcmp.lt.s32.totalorder %v4869_v23, 15 }
 0x409   : > { %2672 = vmatprep.subr.mxu1 %v5216_v22  ;;  %v2758_v22 = vsel %vm5816_vm4, %v2754_v61, %v2756_v1  ;;  %v3036_v32 = vpop.permute.xlu0 %3035  ;;  %vm2937_vm4 = vmand %vm5822_vm13, %vm5821_vm9  ;;  %v2949_v40 = vsel %vm2948_vm7, %v2943_v25, %v2945_v19  ;;  %vm5828_vm7 = vcmask 916480   ;;  %v4355_v1 = vld [vmem:[%s5730_s8 + $0x80] sm:$0xff]  ;;  %v4363_v19 = vld [vmem:[%s5730_s8 + $0x90] sm:$0xff] }
 0x40c   : > { %v3038_v34 = vpop.permute.xlu1 %3037 }
 0x40d   : > { %v3034_v37 = vpop.permute.xlu0 %3033 }
 0x40f   : > { %4340 = vmatmul.mubr.msk.f32.vlgmr.msra.gmra.mrb[2].mxu1 %vm5762_vm2, %v4337_v14 }
 0x410   : > { %2673 = vmatpush1.msra.mxu1 %v5214_v50  ;;  %2736 = vmatprep.mubr.f32.mxu1 %v4708_v0  ;;  %v2757_v50 = vsel %vm5818_vm8, %v2752_v7, %v2754_v61  ;;  %v3126_v38 = vpop.permute.xlu1 %3125  ;;  %vm5825_vm8 = vcmp.lt.s32.totalorder %v4871_v26, 15 }
 0x411   : > { %4344 = vmatprep.subr.msk.mxu1 %vm5817_vm5, %v2758_v22  ;;  %vm5823_vm5 = vcmp.lt.s32.totalorder %v4877_v30, 14  ;;  %v3128_v47 = vpop.permute.xlu0 %3127 }
 0x412   : > { %v3130_v61 = vsel %vm5828_vm7, %v3126_v38, %v3128_v47 }
 0x414   : > { %v3124_v49 = vpop.permute.xlu1 %3123 }
 0x415   : > { %v3216_v54 = vpop.permute.xlu0 %3215 }
 0x417   : > { %4342 = vmatmul.mubr.msk.f32.vlgmr.msra.gmra.mrb[2].mxu1 %vm5762_vm2, %v4341_v21 }
 0x418   : > { %4345 = vmatpush1.msk.msra.mxu1 %vm5819_vm6, %v2757_v50  ;;  %2832 = vmatprep.mubr.f32.mxu1 %v4708_v0  ;;  %vm2936_vm6 = vmand %vm5825_vm8, %vm5824_vm10  ;;  %v3218_v57 = vpop.permute.xlu1 %3217 }
 0x419   : > { %4348 = vmatprep.subr.msk.mxu1 %vm5820_vm14, %v2853_v31  ;;  %vm5826_vm14 = vcmask 924672   ;;  %v3214_v62 = vpop.permute.xlu0 %3213  ;;  %vm5831_vm10 = vmmov %vm5825_vm8  ;;  %vm5832_vm8 = vnez %v5777_v6  ;;  %v4367_v31 = vld [vmem:[%s5730_s8 + $0x98] sm:$0xff] }
 0x41a   : > { %v3040_v48 = vsel %vm5826_vm14, %v3036_v32, %v3038_v34  ;;  %vm5827_vm9 = vmmov %vm5826_vm14  ;;  %vm5833_vm14 = vcmp.lt.s32.totalorder %v4874_v27, 14 }
 0x41b   : > { %v3039_v56 = vsel %vm5827_vm9, %v3034_v37, %v3036_v32  ;;  %vm5834_vm9 = vmmov %vm5822_vm13  ;;  %v4371_v37 = vld [vmem:[%s5730_s8 + $0xa0] sm:$0xff] }
 0x41c   : > { %v3312_v2 = vpop.permute.xlu1 %3311 }
 0x41d   : > { %v3314_v10 = vpop.permute.xlu0 %3313 }
 0x41f   : > { %4346 = vmatmul.mubr.msk.f32.vlgmr.msra.gmra.mrb[2].mxu1 %vm5762_vm2, %v4343_v33 }
 0x420   : > { %4349 = vmatpush1.msk.msra.mxu1 %vm5823_vm5, %v2852_v4  ;;  %2927 = vmatprep.mubr.f32.mxu1 %v4708_v0  ;;  %vm5830_vm5 = vcmask 908288   ;;  %v3310_v11 = vpop.permute.xlu1 %3309 }
 0x421   : > { %4352 = vmatprep.subr.msk.mxu1 %vm2937_vm4, %v2950_v3  ;;  %vm5829_vm4 = vmmov %vm5828_vm7  ;;  %v3220_v8 = vsel %vm5830_vm5, %v3216_v54, %v3218_v57  ;;  %v3411_v17 = vpop.permute.xlu0 %3410  ;;  %v4379_v57 = vld [vmem:[%s5730_s8 + $0xb0] sm:$0xff] }
 0x422   : > { %v3129_v7 = vsel %vm5829_vm4, %v3124_v49, %v3126_v38  ;;  %vm3304_vm7 = vmand %vm5834_vm9, %vm5833_vm14  ;;  %vm5836_vm4 = vnez %v5779_v15  ;;  %vm5837_vm14 = vcmp.lt.s32.totalorder %v4877_v30, 14  ;;  %vm5838_vm9 = vcmp.lt.s32.totalorder %v4871_v26, 15 }
 0x424   : > { %v3413_v22 = vpop.permute.xlu1 %3412 }
 0x425   : > { %v3409_v20 = vpop.permute.xlu0 %3408 }
 0x427   : > { %4350 = vmatmul.mubr.msk.f32.vlgmr.msra.gmra.mrb[2].mxu1 %vm5762_vm2, %v4347_v39 }
 0x428   : > { %4353 = vmatpush1.msk.msra.mxu1 %vm2936_vm6, %v2949_v40  ;;  %3024 = vmatprep.mubr.f32.mxu1 %v4708_v0  ;;  %vm5763_vm6 = vcmask 900096   ;;  %v3508_v24 = vpop.permute.xlu1 %3507 }
 0x429   : > { %4356 = vmatprep.subr.msk.mxu1 %vm4919_vm15, %v3040_v48  ;;  %v3317_v18 = vsel %vm5763_vm6, %v3312_v2, %v3314_v10  ;;  %v3510_v25 = vpop.permute.xlu0 %3509  ;;  %v4375_v48 = vld [vmem:[%s5730_s8 + $0xa8] sm:$0xff] }
 0x42c   : > { %v3506_v32 = vpop.permute.xlu1 %3505 }
 0x42d   : > { %v3603_v4 = vpop.permute.xlu0 %3602 }
 0x42f   : > { %4354 = vmatmul.mubr.msk.f32.vlgmr.msra.gmra.mrb[2].mxu1 %vm5762_vm2, %v4351_v53 }
 0x430   : > { %4357 = vmatpush1.msk.msra.mxu1 %vm4935_vm1, %v3039_v56  ;;  %3114 = vmatprep.mubr.f32.mxu1 %v4708_v0  ;;  %v3605_v3 = vpop.permute.xlu1 %3604 }
 0x431   : > { %4360 = vmatprep.subr.msk.mxu1 %vm5822_vm13, %v3130_v61  ;;  %vm5835_vm13 = vmmov %vm5830_vm5  ;;  %vm3401_vm5 = vcmp.lt.s32.totalorder %v4869_v23, 14  ;;  %v3601_v39 = vpop.permute.xlu0 %3600 }
 0x432   : > { %v3219_v14 = vsel %vm5835_vm13, %v3214_v62, %v3216_v54  ;;  %vm3303_vm13 = vmand %vm5838_vm9, %vm5837_vm14  ;;  %vm3511_vm14 = vcmask 793600   ;;  %vm5843_vm9 = vcmp.ge.s32.totalorder %v4874_v27, 1 }
 0x433   : > { %v3513_v34 = vsel %vm3511_vm14, %v3508_v24, %v3510_v25  ;;  %v3512_v38 = vsel %vm3511_vm14, %v3506_v32, %v3508_v24 }
 0x434   : > { %v3700_v47 = vpop.permute.xlu1 %3699 }
 0x435   : > { %v3702_v49 = vpop.permute.xlu0 %3701 }
 0x437   : > { %4358 = vmatmul.mubr.msk.f32.vlgmr.msra.gmra.mrb[2].mxu1 %vm5762_vm2, %v4355_v1 }
 0x438   : > { %4361 = vmatpush1.msk.msra.mxu1 %vm5831_vm10, %v3129_v7  ;;  %3204 = vmatprep.mubr.f32.mxu1 %v4708_v0  ;;  %vm3414_vm10 = vcmask 801792   ;;  %v3698_v54 = vpop.permute.xlu1 %3697 }
 0x439   : > { %4364 = vmatprep.subr.msk.mxu1 %vm5832_vm8, %v3220_v8  ;;  %vm5840_vm8 = vcmask 900096   ;;  %v3416_v50 = vsel %vm3414_vm10, %v3411_v17, %v3413_v22  ;;  %v3415_v33 = vsel %vm3414_vm10, %v3409_v20, %v3411_v17  ;;  %v3797_v62 = vpop.permute.xlu0 %3796  ;;  %v4383_v8 = vld [vmem:[%s5730_s8 + $0xb8] sm:$0xff] }
 0x43a   : > { %v3316_v21 = vsel %vm5840_vm8, %v3310_v11, %v3312_v2  ;;  %v4387_v11 = vld [vmem:[%s5730_s8 + $0xc0] sm:$0xff] }
 0x43c   : > { %v3799_v61 = vpop.permute.xlu1 %3798 }
 0x43d   : > { %v3795_v7 = vpop.permute.xlu0 %3794 }
 0x43f   : > { %4362 = vmatmul.mubr.msk.f32.vlgmr.msra.gmra.mrb[2].mxu1 %vm5762_vm2, %v4359_v13  ;;  %vm5839_vm2 = vcmp.ge.s32.totalorder %v4874_v27, 2 }
 0x440   : > { %4365 = vmatpush1.msk.msra.mxu1 %vm5836_vm4, %v3219_v14  ;;  %3294 = vmatprep.mubr.f32.mxu1 %v4708_v0  ;;  %vm3403_vm6 = vmand %vm3401_vm5, %vm5839_vm2  ;;  %vm3400_vm4 = vcmp.lt.s32.totalorder %v4871_v26, 14  ;;  %vm5842_vm2 = vcmp.ge.s32.totalorder %v4877_v30, 2 }
 0x441   : > { %4368 = vmatprep.subr.msk.mxu1 %vm3304_vm7, %v3317_v18  ;;  %vm5841_vm7 = vcmask 64512   ;;  %vm3402_vm8 = vmand %vm3400_vm4, %vm5842_vm2  ;;  %vm5845_vm2 = vcmp.ge.s32.totalorder %v4877_v30, 1 }
 0x442   : > { %vm3499_vm10 = vmand %vm3400_vm4, %vm5845_vm2  ;;  %vm3800_vm2 = vcmask 769024  }
 0x443   : > { %v3802_v2 = vsel %vm3800_vm2, %v3797_v62, %v3799_v61  ;;  %v3801_v10 = vsel %vm3800_vm2, %v3795_v7, %v3797_v62  ;;  %v4699_v61 = vld [vmem:[#allocation4 + $0x4] sm:$0xff] }
 0x445   : > { %v3974_v14 = vpop.permute.xlu0 %3973 }
 0x447   : > { %4366 = vmatmul.mubr.msk.f32.vlgmr.msra.gmra.mrb[2].mxu1 %vm5841_vm7, %v4363_v19 }
 0x448   : > { %4369 = vmatpush1.msk.msra.mxu1 %vm3303_vm13, %v3316_v21  ;;  %3391 = vmatprep.mubr.f32.mxu1 %v4708_v0  ;;  %vm3500_vm13 = vmand %vm3401_vm5, %vm5843_vm9 }
 0x449   : > { %4372 = vmatprep.subr.msk.mxu1 %vm3403_vm6, %v3416_v50  ;;  %vm5844_vm6 = vmmov %vm5841_vm7  ;;  %vm3606_vm7 = vcmask 785408  }
 0x44a   : > { %vm5846_vm9 = vmmov %vm5844_vm6  ;;  %v3608_v40 = vsel %vm3606_vm7, %v3603_v4, %v3605_v3  ;;  %v3607_v53 = vsel %vm3606_vm7, %v3601_v39, %v3603_v4 }
 0x44c   : > { %v3978_v18 = vpop.permute.xlu0 %3977 }
 0x44d   : > { %v5649_v13 = vpop.permute.xlu1 %3888 }
 0x44f   : > { %4370 = vmatmul.mubr.msk.f32.vlgmr.msra.gmra.mrb[2].mxu1 %vm5844_vm6, %v4367_v31 }
 0x450   : > { %4373 = vmatpush1.msk.msra.mxu1 %vm3402_vm8, %v3415_v33  ;;  %3490 = vmatprep.mubr.f32.mxu1 %v4708_v0  ;;  %vm3703_vm8 = vcmask 777216   ;;  %v3993_v19 = vpop.permute.xlu0 %3992 }
 0x451   : > { %4376 = vmatprep.subr.msk.mxu1 %vm3500_vm13, %v3513_v34  ;;  %vm5847_vm13 = vcmp.lt.s32.totalorder %v4874_v27, 15  ;;  %v3705_v56 = vsel %vm3703_vm8, %v3700_v47, %v3702_v49  ;;  %v3704_v1 = vsel %vm3703_vm8, %v3698_v54, %v3700_v47  ;;  %v3976_v17 = vpop.permute.xlu1 %3975 }
 0x452   : > { %vm3692_vm14 = vmand %vm3401_vm5, %vm5847_vm13 }
 0x454   : > { %v4008_v21 = vpop.permute.xlu0 %4007 }
 0x455   : > { %v3991_v22 = vpop.permute.xlu1 %3990 }
 0x457   : > { %4374 = vmatmul.mubr.msk.f32.vlgmr.msra.gmra.mrb[2].mxu1 %vm5846_vm9, %v4371_v37  ;;  %vm5849_vm9 = vcmp.lt.s32.totalorder %v4874_v27, 14 }
 0x458   : > { %4377 = vmatpush1.msk.msra.mxu1 %vm3499_vm10, %v3512_v38  ;;  %3587 = vmatprep.mubr.f32.mxu1 %v4708_v0  ;;  %vm5848_vm10 = vcmp.lt.s32.totalorder %v4877_v30, 15  ;;  %vm3789_vm13 = vmand %vm3401_vm5, %vm5849_vm9  ;;  %v4012_v50 = vpop.permute.xlu0 %4011 }
 0x459   : > { %4380 = vmatprep.subr.msk.mxu1 %vm3401_vm5, %v3608_v40  ;;  %vm3691_vm7 = vmand %vm3400_vm4, %vm5848_vm10  ;;  %v3995_v20 = vpop.permute.xlu1 %3994 }
 0x45c   : > { %v4027_v31 = vpop.permute.xlu0 %4026 }
 0x45d   : > { %v4010_v24 = vpop.permute.xlu1 %4009 }
 0x45f   : > { %4378 = vmatmul.mubr.msk.f32.vlgmr.msra.gmra.mrb[2].mxu1 %vm5844_vm6, %v4375_v48 }
 0x460   : > { %4381 = vmatpush1.msk.msra.mxu1 %vm3400_vm4, %v3607_v53  ;;  %3682 = vmatprep.mubr.f32.mxu1 %v4708_v0  ;;  %v4047_v32 = vpop.permute.xlu0 %4046 }
 0x461   : > { %4384 = vmatprep.subr.msk.mxu1 %vm3692_vm14, %v3705_v56  ;;  %vm5850_vm14 = vmmov %vm5844_vm6  ;;  %vm5851_vm6 = vcmp.lt.s32.totalorder %v4877_v30, 14  ;;  %v4025_v25 = vpop.permute.xlu1 %4024 }
 0x462   : > { %vm3788_vm10 = vmand %vm3400_vm4, %vm5851_vm6  ;;  %vm5854_vm4 = vcmask 138240   ;;  %vm5860_vm6 = vcmask 121856  }
 0x463   : > { %vm5852_vm5 = vmmov %vm5850_vm14  ;;  %v3979_v34 = vsel %vm5854_vm4, %v3974_v14, %v3976_v17 }
 0x464   : > { %vm5853_vm8 = vmmov %vm5852_vm5  ;;  %v4051_v3 = vpop.permute.xlu0 %4050  ;;  %v3983_v38 = vsel %vm4927_vm3, %v3979_v34, -3e+38  ;;  %vm5862_vm3 = vcmask 7168  }
 0x465   : > { %vm5855_vm2 = vmmov %vm5854_vm4  ;;  %v4030_v7 = vsel %vm5862_vm3, %v4025_v25, %v4027_v31  ;;  %vm5866_vm4 = vcmask 1039360  }
 0x466   : > { %v3980_v4 = vsel %vm5855_vm2, %v3976_v17, %v3978_v18  ;;  %vm5869_vm2 = vcmp.lt.s32.totalorder %v4874_v27, 15 }
 0x467   : > { %4382 = vmatmul.mubr.msk.f32.vlgmr.msra.gmra.mrb[2].mxu1 %vm5850_vm14, %v4379_v57  ;;  %v3984_v39 = vsel %vm4909_vm12, %v3980_v4, -3e+38  ;;  %vm5859_vm14 = vcmp.ge.s32.totalorder %v4869_v23, 1  ;;  %v4013_v57 = vsel %vm5860_vm6, %v4008_v21, %v4010_v24  ;;  %vm5863_vm12 = vmmov %vm5862_vm3  ;;  %vm5876_vm3 = vcmask 908288  }
 0x468   : > { %4385 = vmatpush1.msk.msra.mxu1 %vm3691_vm7, %v3704_v1  ;;  %3779 = vmatprep.mubr.f32.mxu1 %v4708_v0  ;;  %vm5856_vm7 = vcmask 130048   ;;  %v3987_v48 = vcombine.low %v3983_v38, %v3984_v39  ;;  %v4066_v54 = vpop.permute.xlu0 %4065  ;;  %v4017_v1 = vsel %vm4973_vm11, %v4013_v57, -3e+38  ;;  %vm5867_vm11 = vmmov %vm5866_vm4 }
 0x469   : > { %4388 = vmatprep.subr.msk.mxu1 %vm3789_vm13, %v3802_v2  ;;  %v3996_v40 = vsel %vm5856_vm7, %v3991_v22, %v3993_v19  ;;  %vm5857_vm9 = vmmov %vm5856_vm7  ;;  %vm5858_vm13 = vcmp.ge.s32.totalorder %v4871_v26, 1  ;;  %vm5870_vm7 = vcmask 924672  }
 0x46a   : > { %v3997_v47 = vsel %vm5857_vm9, %v3993_v19, %v3995_v20  ;;  %v4000_v49 = vsel %vm5858_vm13, %v3996_v40, -3e+38  ;;  %v3989_v41 = vmax.f32 %v4699_v61, %v3987_v48  ;;  %vm5871_vm9 = vmmov %vm5870_vm7  ;;  %vm5872_vm13 = vcmask 916480  }
 0x46b   : > { %v4001_v53 = vsel %vm5859_vm14, %v3997_v47, -3e+38  ;;  %vm5873_vm14 = vmmov %vm5872_vm13 }
 0x46c   : > { %v4004_v62 = vcombine.low %v4000_v49, %v4001_v53 }
 0x46e   : > { %v4006_v14 = vmax.f32 %v3989_v41, %v4004_v62 }
 0x46f   : > { %4386 = vmatmul.mubr.msk.f32.vlgmr.msra.gmra.mrb[2].mxu1 %vm5852_vm5, %v4383_v8  ;;  %vm5864_vm5 = vcmp.ge.s32.totalorder %v4877_v30, 1 }
 0x470   : > { %4389 = vmatpush1.msk.msra.mxu1 %vm3788_vm10, %v3801_v10  ;;  %3876 = vmatprep.mubr.f32.mxu1 %v4708_v0  ;;  %v4029_v0 = vpop.permute.xlu1 %4028  ;;  %vm5861_vm10 = vmmov %vm5860_vm6  ;;  %v4081_v10 = vpop.permute.xlu0 %4080  ;;  %v4034_v18 = vsel %vm5864_vm5, %v4030_v7, -3e+38  ;;  %vm5874_vm6 = vcmp.lt.s32.totalorder %v4871_v26, 15  ;;  %vm5880_vm5 = vcmask 523264  }
 0x471   : > { %v4014_v43 = vsel %vm5861_vm10, %v4010_v24, %v4012_v50  ;;  %v4031_v8 = vsel %vm5863_vm12, %v4027_v31, %v4029_v0  ;;  %vm5875_vm10 = vcmp.lt.s32.totalorder %v4869_v23, 15  ;;  %vm5879_vm12 = vnez %v5777_v6 }
 0x472   : > { %v4018_v2 = vsel %vm4965_vm0, %v4014_v43, -3e+38  ;;  %vm5868_vm0 = vcmp.lt.s32.totalorder %v4877_v30, 15 }
 0x473   : > { %v4021_v17 = vcombine.low %v4017_v1, %v4018_v2 }
 0x474   : > { %v4049_v33 = vpop.permute.xlu1 %4048  ;;  %v4085_v50 = vpop.permute.xlu0 %4084 }
 0x475   : > { %v4052_v58 = vsel %vm5866_vm4, %v4047_v32, %v4049_v33  ;;  %v4053_v19 = vsel %vm5867_vm11, %v4049_v33, %v4051_v3  ;;  %v4023_v55 = vmax.f32 %v4006_v14, %v4021_v17 }
 0x476   : > { %v4056_v21 = vsel %vm5868_vm0, %v4052_v58, -3e+38  ;;  %v4057_v24 = vsel %vm5869_vm2, %v4053_v19, -3e+38 }
 0x477   : > { %4390 = vmatmul.mubr.msk.f32.vlgmr.msra.gmra.mrb[2].mxu1 %vm5853_vm8, %v4387_v11  ;;  %vm5865_vm8 = vcmp.ge.s32.totalorder %v4874_v27, 1  ;;  %v4060_v4 = vcombine.low %v4056_v21, %v4057_v24 }
 0x478   : > { %v4064_v37 = vpop.permute.xlu1 %4063  ;;  %v4035_v22 = vsel %vm5865_vm8, %v4031_v8, -3e+38  ;;  %v4100_v27 = vpop.permute.xlu0 %4099  ;;  %vm4190_vm8 = vcmask 519168  }
 0x479   : > { %v4038_v20 = vcombine.low %v4034_v18, %v4035_v22  ;;  %v4069_v31 = vsel %vm5870_vm7, %v4064_v37, %v4066_v54 }
 0x47a   : > { %v4073_v32 = vsel %vm4935_vm1, %v4069_v31, -3e+38  ;;  %vm5877_vm1 = vmmov %vm5876_vm3 }
 0x47b   : > { %v4040_v34 = vmax.f32 %v4023_v55, %v4038_v20 }
 0x47c   : > { %v4068_v56 = vpop.permute.xlu1 %4067 }
 0x47d   : > { %v4070_v0 = vsel %vm5871_vm9, %v4066_v54, %v4068_v56  ;;  %v4062_v39 = vmax.f32 %v4040_v34, %v4060_v4 }
 0x47e   : > { %v4074_v33 = vsel %vm4919_vm15, %v4070_v0, -3e+38  ;;  %vm5878_vm15 = vnez %v5779_v15 }
 0x47f   : > { %v4077_v40 = vcombine.low %v4073_v32, %v4074_v33 }
 0x480   : > { %v4083_v11 = vpop.permute.xlu1 %4082 }
 0x481   : > { %v4086_v30 = vsel %vm5872_vm13, %v4081_v10, %v4083_v11  ;;  %v4087_v3 = vsel %vm5873_vm14, %v4083_v11, %v4085_v50  ;;  %v4079_v42 = vmax.f32 %v4062_v39, %v4077_v40 }
 0x482   : > { %v4090_v37 = vsel %vm5874_vm6, %v4086_v30, -3e+38  ;;  %v4091_v47 = vsel %vm5875_vm10, %v4087_v3, -3e+38 }
 0x483   : > { %v4094_v49 = vcombine.low %v4090_v37, %v4091_v47 }
 0x484   : > { %v4098_v25 = vpop.permute.xlu1 %4097 }
 0x485   : > { %v4103_v46 = vsel %vm5876_vm3, %v4098_v25, %v4100_v27  ;;  %v4096_v56 = vmax.f32 %v4079_v42, %v4094_v49 }
 0x486   : > { %v4107_v53 = vsel %vm5878_vm15, %v4103_v46, -3e+38 }
 0x488   : > { %v4102_v38 = vpop.permute.xlu1 %4101 }
 0x489   : > { %v4104_v48 = vsel %vm5877_vm1, %v4100_v27, %v4102_v38 }
 0x48a   : > { %v4108_v54 = vsel %vm5879_vm12, %v4104_v48, -3e+38 }
 0x48b   : > { %v4111_v57 = vcombine.low %v4107_v53, %v4108_v54 }
 0x48d   : > { %v4113_v26 = vmax.f32 %v4096_v56, %v4111_v57 }
 0x48f   : > { %v4115_v1 = vcombine.high %v4113_v26, %v4113_v26 }
 0x54a   : > { %v3878_v43 = vpop.f32.mrb[2].mxu1 }
 0x54b   : > { %v3891_v61 = vadd.f32 %v5649_v13, %v3878_v43  ;;  %v3880_v23 = vpop.f32.mrb[3].mxu1 }
 0x54c   : > { %v3892_v41 = vadd.f32 %v5649_v13, %v3880_v23 }
 0x54d   : > { %v3893_v2 = vmax.f32 %v3891_v61, 0.0 }
 0x54e   : > { %v3894_v62 = vmax.f32 %v3892_v41, 0.0 }
 0x550   : > { %3959 = vmatprep.mubr.f32.mxu0 %v3894_v62 }
 0x551   : > { %3960 = vmatmul.mubr.f32.vlgmr.msra.gmra.mrb[8].mxu0 %v3893_v2 }
 0x552   : > { %4566 = vmatpush3.bf16.msra.mxu0 %v5049_v28  ;;  %4181 = vmatprep.mubr.f32.mxu0 %v4115_v1 }
 0x553   : > { %4568 = vmatprep.subr.bf16.mxu0 %v5055_v29 }
 0x556   : > { %4570 = vmatpush3.bf16.msra.mxu0 %v5074_v35 }
 0x557   : > { %4572 = vmatprep.subr.bf16.mxu0 %v5077_v36 }
 0x55a   : > { %4574 = vmatpush3.bf16.msra.mxu0 %v5092_v44 }
 0x55b   : > { %4576 = vmatprep.subr.bf16.mxu0 %v5095_v45 }
 0x55e   : > { %4578 = vmatpush3.bf16.msra.mxu0 %v5110_v51 }
 0x55f   : > { %4580 = vmatprep.subr.bf16.mxu0 %v5113_v52 }
 0x562   : > { %4582 = vmatpush3.bf16.msra.mxu0 %v5128_v59 }
 0x563   : > { %4584 = vmatprep.subr.bf16.mxu0 %v5131_v60 }
 0x566   : > { %4586 = vmatpush3.bf16.msra.mxu0 %v5140_v63 }
 0x567   : > { %4588 = vmatprep.subr.bf16.mxu0 %v5150_v5 }
 0x56a   : > { %4590 = vmatpush3.bf16.msra.mxu0 %v5158_v9 }
 0x56b   : > { %4592 = vmatprep.subr.bf16.mxu0 %v5168_v12 }
 0x56e   : > { %4594 = vmatpush3.bf16.msra.mxu0 %v5176_v16 }
 0x571   : > { %4182 = vmatmul.mubr.f32.vlgmr.msra.gmra.mrb[10].mxu0 %v4113_v26 }
 0x624   : > { %v4461_v6 = vpop.f32.mrb[8].mxu0 }
 0x625   : > { %v4462_v15 = vpop.f32.mrb[9].mxu0 }
 0x626   : > { %v4463_v28 = vadd.f32 %v4462_v15, %v4461_v6 }
 0x628   : > { %4189 = vst.msk [vmem:[%s5210_s28 + $0x8] sm:$0xff] %vm5880_vm5, %v4463_v28 }
 0x644   : > { %v4496_v29 = vpop.f32.mrb[10].mxu0 }
 0x645   : > { %v4497_v35 = vpop.f32.mrb[11].mxu0 }
 0x646   : > { %v4498_v36 = vadd.f32 %v4497_v35, %v4496_v29 }
 0x648   : > { %4191 = vst.msk [vmem:[%s5210_s28 + $0x10] sm:$0xf] %vm4190_vm8, %v4498_v36 }
 0x649 PF: > { %s20_s13 = sadd.s32 1, %s4706_s13  }
 0x64a   : > { %p17_p4 = scmp.ge.s32.totalorder %s20_s13, 4  }
 0x64c   :  { %19 = sbr.rel (!%p17_p4) target bundleno = 1 (0x1), region = 122 }

</bundles_post_ra>
